<compile_context>
chip_gen: v7x
topology: tpu7x:2x2x1
jax: 0.10.0
libtpu: 0.0.40
codegen_flags: <defaults>
</compile_context>

<pallas_src>
import jax
import jax.numpy as jnp
import numpy as np
from jax import lax
from jax.experimental import pallas as pl
from jax.experimental.pallas import tpu as pltpu

LANE = 128
SUBLANE = 8


def _ru(n, m):
    return ((n + m - 1) // m) * m


# ------------------------------ fused kernel --------------------------------

def _make_fused_gln_kernel(plan, has_v, has_bias, has_s_last):
    """All GLNElement layers chained inside one kernel body (one batch tile)."""
    HI = lax.Precision.HIGHEST

    def kernel(*refs):
        idx = 0
        x_ref = refs[idx]; idx += 1                    # (tb, xpad) original input
        v_ref = beta_ref = bias_ref = None
        if has_v:
            v_ref = refs[idx]; idx += 1                # (xpad, total_v) sign-baked V
            beta_ref = refs[idx]; idx += 1             # (1, total_v)  sign-baked beta
        if has_bias:
            bias_ref = refs[idx]; idx += 1             # (1, total_bias)
        w_refs = [refs[idx + i] for i in range(len(plan))]
        idx += len(plan)
        s_ref = None
        if has_s_last:
            s_ref = refs[idx]; idx += 1                # only if the LAST layer is gated
        o_ref = refs[idx]                              # (tb, out_pad)

        x = x_ref[...]                                 # original input (context source)
        act = x
        for L, w_r in zip(plan, w_refs):
            ncp, nc, sh = L["ncp"], L["nc"], L["sh"]

            # Linear part.  The previous layer's context reduction is folded into
            # this weight offline, so one HIGHEST-precision dot does both.
            y = jnp.dot(act, w_r[...], precision=HI,
                        preferred_element_type=jnp.float32)
            if L["bias_off"] is not None:
                bo = L["bias_off"]
                y = y + bias_ref[:, bo:bo + ncp]

            if nc > 1:
                vo = L["v_off"]
                mask = None
                for s in range(sh):                    # sh is tiny, fully unrolled
                    lo = vo + s * ncp                  # 128-aligned static slice
                    # Hyperplane projection at DEFAULT precision (single bf16
                    # MXU pass): exact for +-1 normals, integer-valued x and a
                    # +-0.5 threshold, so the context bits match the f32 ref.
                    h = jnp.dot(x, v_ref[:, lo:lo + ncp],
                                preferred_element_type=jnp.float32)
                    t = h > beta_ref[:, lo:lo + ncp]   # parity already baked in
                    mask = t if mask is None else jnp.logical_and(mask, t)
                y = jnp.where(mask, y, 0.0)            # one select, full-width
            act = y

        if has_s_last:                                 # gated output layer only
            act = jnp.dot(act, s_ref[...], precision=HI,
                          preferred_element_type=jnp.float32)

        o_ref[...] = act                               # lane-dense (padded) output

    return kernel


def gln_forward_pallas(x, kp, tb=128):
    """Whole-network forward in one pallas_call, tiled only over the batch."""
    B, d_in = x.shape
    xpad = kp["xpad"]
    Bp = _ru(B, tb)                                    # remainder handled by padding
    x_pad = jnp.zeros((Bp, xpad), jnp.float32).at[:B, :d_in].set(
        x.astype(jnp.float32))

    def const_spec(a):
        return pl.BlockSpec(a.shape, lambda i: (0, 0))

    args = [x_pad]
    in_specs = [pl.BlockSpec((tb, xpad), lambda i: (i, 0))]
    has_v = kp["v_all"] is not None
    if has_v:
        args += [kp["v_all"], kp["beta_all"]]
        in_specs += [const_spec(kp["v_all"]), const_spec(kp["beta_all"])]
    has_bias = kp["bias_all"] is not None
    if has_bias:
        args.append(kp["bias_all"])
        in_specs.append(const_spec(kp["bias_all"]))
    for w in kp["w"]:
        args.append(w)
        in_specs.append(const_spec(w))
    has_s_last = kp["s_last"] is not None
    if has_s_last:
        args.append(kp["s_last"])
        in_specs.append(const_spec(kp["s_last"]))

    out_pad = kp["out_pad"]
    kernel = _make_fused_gln_kernel(kp["plan"], has_v, has_bias, has_s_last)
    out = pl.pallas_call(
        kernel,
        out_shape=jax.ShapeDtypeStruct((Bp, out_pad), jnp.float32),
        grid_spec=pltpu.PrefetchScalarGridSpec(
            num_scalar_prefetch=0,
            grid=(Bp // tb,),
            in_specs=in_specs,
            out_specs=pl.BlockSpec((tb, out_pad), lambda i: (i, 0)),
        ),
        compiler_params=pltpu.CompilerParams(
            dimension_semantics=("parallel",),
            vmem_limit_bytes=32 * 1024 * 1024,
        ),
    )(*args)
    return out[:B, :kp["outp_dim"]]


# ------------------------- parameter construction ---------------------------

def orthogonal_init(key, rows, cols):
    """QR-based orthogonal init (same semantics as nn.init.orthogonal_)."""
    a = jax.random.normal(key, (max(rows, cols), min(rows, cols)), jnp.float32)
    q, r = jnp.linalg.qr(a)
    q = q * jnp.sign(jnp.diagonal(r))[None, :]
    if rows < cols:
        q = q.T
    return q


def build_gln_params(key, inp_dim, latent_dims, outp_dim, shatter_dims, bias=True):
    # TODO(synk): torch.manual_seed-based RNG streams are not replicated; weights
    # are deterministic via JAX PRNG instead.
    dims_in = [inp_dim] + list(latent_dims)
    dims_out = list(latent_dims) + [outp_dim]
    layers = []
    use_bias = False  # GLN.__init__: first GLNElement has bias=False
    for d_in, d_out, sh in zip(dims_in, dims_out, shatter_dims):
        nc = 2 ** sh
        key, kw, kb, kv = jax.random.split(key, 4)

        # PyTorch layout: Linear(d_in, d_out*nc).weight rows ordered o-major
        # (fun(x).reshape(..., outp_dim, n_contexts) puts contexts last).
        W_pt = np.asarray(orthogonal_init(kw, d_out * nc, d_in))
        b_pt = None
        if use_bias:
            bound = 1.0 / np.sqrt(d_in)
            b_pt = np.asarray(
                jax.random.uniform(kb, (d_out * nc,), jnp.float32, -bound, bound))

        V_pt = beta_pt = None
        if nc > 1:
            # HyperplaneContext(inp_dim, d_out, sh): +-1 normals vs original
            # input, threshold 0.5 (decisions exactly representable).
            V_pt = np.asarray(
                2.0 * jax.random.bernoulli(kv, 0.5, (d_out * sh, inp_dim))
                .astype(jnp.float32) - 1.0)
            beta_pt = np.full((d_out * sh,), 0.5, np.float32)

        layers.append(dict(inp_dim=d_in, outp_dim=d_out, shatter_dim=sh,
                           n_contexts=nc, W_pt=W_pt, b_pt=b_pt,
                           V_pt=V_pt, beta_pt=beta_pt))
        use_bias = bias
    return layers


def build_kernel_params(layers, inp_dim):
    """Pre-folded, context-major kernel layouts: lanes padded to 128, K dims to 8."""
    xpad = _ru(inp_dim, SUBLANE)        # contraction dim: sublane multiple suffices
    plan, w_list = [], []
    v_blocks, beta_blocks, bias_blocks = [], [], []
    v_off = bias_off = 0
    s_last = None
    n_layers = len(layers)
    # Shape of the activation the NEXT layer's matmul will contract over:
    prev_nc, prev_dout, prev_width = 1, inp_dim, xpad

    for i, L in enumerate(layers):
        d_in, d_out = L["inp_dim"], L["outp_dim"]
        sh, nc = L["shatter_dim"], L["n_contexts"]
        ncp = _ru(nc * d_out, LANE)

        # Context-major columns: col = c*d_out + o.
        Wcm = (L["W_pt"].reshape(d_out, nc, d_in)
               .transpose(1, 0, 2).reshape(nc * d_out, d_in))
        WcmT = Wcm.T                                   # (d_in, nc*d_out)
        # Fold the previous layer's block-one-hot context reduction into this
        # layer's weight: row (c_prev*d_in + o_prev) := W[o_prev, :]  (exact).
        Wk = np.zeros((prev_width, ncp), np.float32)
        for c in range(prev_nc):
            Wk[c * prev_dout:c * prev_dout + d_in, :nc * d_out] = WcmT
        w_list.append(jnp.asarray(Wk))

        bo = None
        if L["b_pt"] is not None:
            bk = np.zeros((1, ncp), np.float32)
            bk[0, :nc * d_out] = L["b_pt"].reshape(d_out, nc).T.reshape(-1)
            bias_blocks.append(bk)
            bo = bias_off
            bias_off += ncp

        vo = None
        if nc > 1:
            vo = v_off
            col_ctx = np.arange(nc)
            for s in range(sh):
                # Bake parity sign into V and beta so the gate is one compare:
                # sign = +1 if bit s of the column's context is 1 else -1.
                Vs = L["V_pt"].reshape(d_out, sh, inp_dim)[:, s, :]    # (d_out, inp)
                bs = L["beta_pt"].reshape(d_out, sh)[:, s]             # (d_out,)
                signs = (2.0 * ((col_ctx >> s) & 1) - 1.0).astype(np.float32)
                Ve = np.zeros((xpad, ncp), np.float32)
                be = np.full((1, ncp), 1e30, np.float32)               # pad: gate off
                for c in range(nc):
                    Ve[:inp_dim, c * d_out:(c + 1) * d_out] = Vs.T * signs[c]
                    be[0, c * d_out:(c + 1) * d_out] = signs[c] * bs
                v_blocks.append(Ve)
                beta_blocks.append(be)
                v_off += ncp

        plan.append(dict(ncp=ncp, nc=nc, sh=sh, v_off=vo, bias_off=bo))

        if nc > 1 and i == n_layers - 1:
            # Gated output layer: keep one explicit context reduction to out_pad.
            op = _ru(d_out, LANE)
            sk = np.zeros((ncp, op), np.float32)
            for c in range(nc):
                sk[c * d_out:(c + 1) * d_out, :d_out] = np.eye(d_out, dtype=np.float32)
            s_last = jnp.asarray(sk)

        if nc > 1:
            prev_nc, prev_dout, prev_width = nc, d_out, ncp
        else:
            prev_nc, prev_dout, prev_width = 1, d_out, ncp

    out_pad = s_last.shape[1] if s_last is not None else plan[-1]["ncp"]
    v_all = jnp.asarray(np.concatenate(v_blocks, axis=1)) if v_blocks else None
    beta_all = jnp.asarray(np.concatenate(beta_blocks, axis=1)) if v_blocks else None
    bias_all = jnp.asarray(np.concatenate(bias_blocks, axis=1)) if bias_blocks else None
    return dict(xpad=xpad, plan=plan, w=w_list, v_all=v_all, beta_all=beta_all,
                bias_all=bias_all, s_last=s_last, out_pad=out_pad,
                outp_dim=layers[-1]["outp_dim"])


# --------------------------- pure-JAX reference -----------------------------

def gln_forward_ref(x, layers):
    HI = lax.Precision.HIGHEST
    B = x.shape[0]
    out = x
    for L in layers:
        y = jnp.dot(out, L["W_pt"].T, precision=HI)
        if L["b_pt"] is not None:
            y = y + L["b_pt"]
        nc, sh, od = L["n_contexts"], L["shatter_dim"], L["outp_dim"]
        if nc > 1:
            h = jnp.dot(x, L["V_pt"].T, precision=HI)
            bits = (h > L["beta_pt"]).reshape(B, od, sh)
            idx = jnp.sum(bits.astype(jnp.int32) * (2 ** jnp.arange(sh)), axis=-1)
            con = jax.nn.one_hot(idx, nc, dtype=jnp.float32)
            out = jnp.sum(y.reshape(B, od, nc) * con, axis=-1)
        else:
            out = y
    return out


# --------------------------------- main -------------------------------------

if __name__ == "__main__":
    key = jax.random.PRNGKey(0)
    k_param, k_x = jax.random.split(key)

    B = 512                      # tb=128 -> grid=(4,): >=2 steps per v7x TensorCore
    inp_dim = 16
    latent_dims = (32, 16)
    outp_dim = 8
    shatter_dims = (2, 1, 0)     # one per (latent + output) stage

    layers = build_gln_params(k_param, inp_dim, latent_dims, outp_dim,
                              shatter_dims, bias=True)
    kp = build_kernel_params(layers, inp_dim)

    # Integer-valued inputs keep the context hyperplane decisions exact under
    # the single-pass bf16 MXU projection (and across the f32 reference).
    x = jax.random.randint(k_x, (B, inp_dim), -2, 3).astype(jnp.float32)

    out = jax.block_until_ready(gln_forward_pallas(x, kp, tb=128))

    ref = gln_forward_ref(x, layers)
    assert out.shape == (B, outp_dim)
    np.testing.assert_allclose(np.asarray(out), np.asarray(ref),
                               rtol=1e-4, atol=1e-4)
    print("KERNEL_OK")
</pallas_src>

<mosaic_0001>
module attributes {stable_mosaic.version = 11 : i64} {
  func.func @kernel(%arg0: i32, %arg1: memref<128x16xf32, #tpu.memory_space<vmem>>, %arg2: memref<16x384xf32, #tpu.memory_space<vmem>>, %arg3: memref<1x384xf32, #tpu.memory_space<vmem>>, %arg4: memref<1x256xf32, #tpu.memory_space<vmem>>, %arg5: memref<16x128xf32, #tpu.memory_space<vmem>>, %arg6: memref<128x128xf32, #tpu.memory_space<vmem>>, %arg7: memref<128x128xf32, #tpu.memory_space<vmem>>, %arg8: memref<128x128xf32, #tpu.memory_space<vmem>>) attributes {dimension_semantics = [#tpu.dimension_semantics<parallel>], iteration_bounds = array<i64: 4>, scalar_prefetch = 0 : i64, scratch_operands = 0 : i64, tpu.core_type = #tpu.core_type<tc>, window_params = [{transform_indices = @transform_0, window_bounds = array<i64: 128, 16>}, {pipeline_mode = #tpu.pipeline_mode<synchronous>, transform_indices = @transform_1, window_bounds = array<i64: 16, 384>}, {pipeline_mode = #tpu.pipeline_mode<synchronous>, transform_indices = @transform_2, window_bounds = array<i64: 1, 384>}, {pipeline_mode = #tpu.pipeline_mode<synchronous>, transform_indices = @transform_3, window_bounds = array<i64: 1, 256>}, {pipeline_mode = #tpu.pipeline_mode<synchronous>, transform_indices = @transform_4, window_bounds = array<i64: 16, 128>}, {pipeline_mode = #tpu.pipeline_mode<synchronous>, transform_indices = @transform_5, window_bounds = array<i64: 128, 128>}, {pipeline_mode = #tpu.pipeline_mode<synchronous>, transform_indices = @transform_6, window_bounds = array<i64: 128, 128>}, {transform_indices = @transform_7, window_bounds = array<i64: 128, 128>}]} {
    %c0 = arith.constant 0 : index
    %c0_0 = arith.constant 0 : index
    %0 = vector.load %arg1[%c0, %c0_0] : memref<128x16xf32, #tpu.memory_space<vmem>>, vector<128x16xf32>
    %c0_1 = arith.constant 0 : index
    %c0_2 = arith.constant 0 : index
    %1 = vector.load %arg5[%c0_1, %c0_2] : memref<16x128xf32, #tpu.memory_space<vmem>>, vector<16x128xf32>
    %cst = arith.constant dense<0.000000e+00> : vector<128x128xf32>
    %2 = tpu.matmul %0, %1, %cst {dimension_numbers = #tpu.dot_dimension_numbers<[1], [0], [0], [1], [0, 0, 1, 1], [], []>, precision = #tpu.contract_precision<fp32>} : vector<128x16xf32>, vector<16x128xf32>, vector<128x128xf32> -> vector<128x128xf32>
    %c0_3 = arith.constant 0 : index
    %c0_4 = arith.constant 0 : index
    %3 = vector.load %arg2[%c0_3, %c0_4] : memref<16x384xf32, #tpu.memory_space<vmem>>, vector<16x128xf32>
    %cst_5 = arith.constant dense<0.000000e+00> : vector<128x128xf32>
    %4 = tpu.matmul %0, %3, %cst_5 {dimension_numbers = #tpu.dot_dimension_numbers<[1], [0], [0], [1], [0, 0, 1, 1], [], []>} : vector<128x16xf32>, vector<16x128xf32>, vector<128x128xf32> -> vector<128x128xf32>
    %c0_6 = arith.constant 0 : index
    %c0_7 = arith.constant 0 : index
    %5 = vector.load %arg3[%c0_6, %c0_7] : memref<1x384xf32, #tpu.memory_space<vmem>>, vector<1x128xf32>
    %6 = vector.broadcast %5 : vector<1x128xf32> to vector<128x128xf32>
    %7 = arith.cmpf ogt, %4, %6 : vector<128x128xf32>
    %c0_8 = arith.constant 0 : index
    %c128 = arith.constant 128 : index
    %8 = vector.load %arg2[%c0_8, %c128] : memref<16x384xf32, #tpu.memory_space<vmem>>, vector<16x128xf32>
    %cst_9 = arith.constant dense<0.000000e+00> : vector<128x128xf32>
    %9 = tpu.matmul %0, %8, %cst_9 {dimension_numbers = #tpu.dot_dimension_numbers<[1], [0], [0], [1], [0, 0, 1, 1], [], []>} : vector<128x16xf32>, vector<16x128xf32>, vector<128x128xf32> -> vector<128x128xf32>
    %c0_10 = arith.constant 0 : index
    %c128_11 = arith.constant 128 : index
    %10 = vector.load %arg3[%c0_10, %c128_11] : memref<1x384xf32, #tpu.memory_space<vmem>>, vector<1x128xf32>
    %11 = vector.broadcast %10 : vector<1x128xf32> to vector<128x128xf32>
    %12 = arith.cmpf ogt, %9, %11 : vector<128x128xf32>
    %13 = arith.andi %7, %12 : vector<128x128xi1>
    %cst_12 = arith.constant 0.000000e+00 : f32
    %14 = vector.broadcast %cst_12 : f32 to vector<128x128xf32>
    %15 = arith.select %13, %2, %14 : vector<128x128xi1>, vector<128x128xf32>
    %c0_13 = arith.constant 0 : index
    %c0_14 = arith.constant 0 : index
    %16 = vector.load %arg6[%c0_13, %c0_14] : memref<128x128xf32, #tpu.memory_space<vmem>>, vector<128x128xf32>
    %cst_15 = arith.constant dense<0.000000e+00> : vector<128x128xf32>
    %17 = tpu.matmul %15, %16, %cst_15 {dimension_numbers = #tpu.dot_dimension_numbers<[1], [0], [0], [1], [0, 0, 1, 1], [], []>, precision = #tpu.contract_precision<fp32>} : vector<128x128xf32>, vector<128x128xf32>, vector<128x128xf32> -> vector<128x128xf32>
    %c0_16 = arith.constant 0 : index
    %c0_17 = arith.constant 0 : index
    %18 = vector.load %arg4[%c0_16, %c0_17] : memref<1x256xf32, #tpu.memory_space<vmem>>, vector<1x128xf32>
    %19 = vector.broadcast %18 : vector<1x128xf32> to vector<128x128xf32>
    %20 = arith.addf %17, %19 : vector<128x128xf32>
    %c0_18 = arith.constant 0 : index
    %c256 = arith.constant 256 : index
    %21 = vector.load %arg2[%c0_18, %c256] : memref<16x384xf32, #tpu.memory_space<vmem>>, vector<16x128xf32>
    %cst_19 = arith.constant dense<0.000000e+00> : vector<128x128xf32>
    %22 = tpu.matmul %0, %21, %cst_19 {dimension_numbers = #tpu.dot_dimension_numbers<[1], [0], [0], [1], [0, 0, 1, 1], [], []>} : vector<128x16xf32>, vector<16x128xf32>, vector<128x128xf32> -> vector<128x128xf32>
    %c0_20 = arith.constant 0 : index
    %c256_21 = arith.constant 256 : index
    %23 = vector.load %arg3[%c0_20, %c256_21] : memref<1x384xf32, #tpu.memory_space<vmem>>, vector<1x128xf32>
    %24 = vector.broadcast %23 : vector<1x128xf32> to vector<128x128xf32>
    %25 = arith.cmpf ogt, %22, %24 : vector<128x128xf32>
    %cst_22 = arith.constant 0.000000e+00 : f32
    %26 = vector.broadcast %cst_22 : f32 to vector<128x128xf32>
    %27 = arith.select %25, %20, %26 : vector<128x128xi1>, vector<128x128xf32>
    %c0_23 = arith.constant 0 : index
    %c0_24 = arith.constant 0 : index
    %28 = vector.load %arg7[%c0_23, %c0_24] : memref<128x128xf32, #tpu.memory_space<vmem>>, vector<128x128xf32>
    %cst_25 = arith.constant dense<0.000000e+00> : vector<128x128xf32>
    %29 = tpu.matmul %27, %28, %cst_25 {dimension_numbers = #tpu.dot_dimension_numbers<[1], [0], [0], [1], [0, 0, 1, 1], [], []>, precision = #tpu.contract_precision<fp32>} : vector<128x128xf32>, vector<128x128xf32>, vector<128x128xf32> -> vector<128x128xf32>
    %c0_26 = arith.constant 0 : index
    %c128_27 = arith.constant 128 : index
    %30 = vector.load %arg4[%c0_26, %c128_27] : memref<1x256xf32, #tpu.memory_space<vmem>>, vector<1x128xf32>
    %31 = vector.broadcast %30 : vector<1x128xf32> to vector<128x128xf32>
    %32 = arith.addf %29, %31 : vector<128x128xf32>
    %c0_28 = arith.constant 0 : index
    %c0_29 = arith.constant 0 : index
    %33 = vector.load %arg8[%c0_28, %c0_29] : memref<128x128xf32, #tpu.memory_space<vmem>>, vector<128x128xf32>
    tpu.vector_store %arg8[%c0_28, %c0_29], %32 {strides = array<i32>} : memref<128x128xf32, #tpu.memory_space<vmem>>, vector<128x128xf32>,
    return
  }
  func.func @transform_0(%arg0: i32) -> (i32, i32) {
    %c0_i32 = arith.constant 0 : i32
    %c0_i32_0 = arith.constant 0 : i32
    return %arg0, %c0_i32 : i32, i32
  }
  func.func @transform_1(%arg0: i32) -> (i32, i32) {
    %c0_i32 = arith.constant 0 : i32
    %c0_i32_0 = arith.constant 0 : i32
    %c0_i32_1 = arith.constant 0 : i32
    return %c0_i32, %c0_i32_0 : i32, i32
  }
  func.func @transform_2(%arg0: i32) -> (i32, i32) {
    %c0_i32 = arith.constant 0 : i32
    %c0_i32_0 = arith.constant 0 : i32
    %c0_i32_1 = arith.constant 0 : i32
    return %c0_i32, %c0_i32_0 : i32, i32
  }
  func.func @transform_3(%arg0: i32) -> (i32, i32) {
    %c0_i32 = arith.constant 0 : i32
    %c0_i32_0 = arith.constant 0 : i32
    %c0_i32_1 = arith.constant 0 : i32
    return %c0_i32, %c0_i32_0 : i32, i32
  }
  func.func @transform_4(%arg0: i32) -> (i32, i32) {
    %c0_i32 = arith.constant 0 : i32
    %c0_i32_0 = arith.constant 0 : i32
    %c0_i32_1 = arith.constant 0 : i32
    return %c0_i32, %c0_i32_0 : i32, i32
  }
  func.func @transform_5(%arg0: i32) -> (i32, i32) {
    %c0_i32 = arith.constant 0 : i32
    %c0_i32_0 = arith.constant 0 : i32
    %c0_i32_1 = arith.constant 0 : i32
    return %c0_i32, %c0_i32_0 : i32, i32
  }
  func.func @transform_6(%arg0: i32) -> (i32, i32) {
    %c0_i32 = arith.constant 0 : i32
    %c0_i32_0 = arith.constant 0 : i32
    %c0_i32_1 = arith.constant 0 : i32
    return %c0_i32, %c0_i32_0 : i32, i32
  }
  func.func @transform_7(%arg0: i32) -> (i32, i32) {
    %c0_i32 = arith.constant 0 : i32
    %c0_i32_0 = arith.constant 0 : i32
    return %arg0, %c0_i32 : i32, i32
  }
}

</mosaic_0001>

<bundles_post_ra>
// kernel: tpu_custom_call.1
= control target key start
LH: loop header
LB: loop body
LE: loop exit
PB: predicated region body
PF: predicated region fallthrough
CT: control target
= control target key end

     0   :  { %12 = vsyncpa [#allocation3], 0  ;;  %s9184_s0 = inlined_call_operand.vmem [shape: f32[512,16], index: 0, kind: input, shape index: {}]   ;;  %s9185_s1 = inlined_call_operand.vmem [shape: f32[16,384], index: 1, kind: input, shape index: {}]   ;;  %s9186_s2 = inlined_call_operand.vmem [shape: f32[1,384], index: 2, kind: input, shape index: {}]   ;;  %s9187_s3 = inlined_call_operand.vmem [shape: f32[1,256], index: 3, kind: input, shape index: {}]   ;;  %s9188_s4 = inlined_call_operand.vmem [shape: f32[16,128], index: 4, kind: input, shape index: {}]   ;;  %s9189_s5 = inlined_call_operand.vmem [shape: f32[128,128], index: 5, kind: input, shape index: {}]   ;;  %s9190_s6 = inlined_call_operand.vmem [shape: f32[128,128], index: 6, kind: input, shape index: {}]   ;;  %s9191_s7 = inlined_call_operand.hbm [shape: f32[512,128], index: 7, kind: output, shape index: {}]  }
   0x1   :  { %14 = vsyncpa [#allocation3 + $0x1], 0  ;;  %s7112_s24 = smov 0   ;;  %s7114_s25 = smov 0  }
   0x2   :  { %s7116_s26 = smov 0   ;;  %s7118_s27 = smov 0  }
   0x3 LB: > { %s7133_s28 = sadd.s32 4294967295, %s7067_s27   ;;  %s4719_s29 = sadd.s32 4294967294, %s7067_s27   ;;  %s7067_s27 = sphi %s7118_s27, %s9475_s27   ;;  %s7063_s26 = sphi %s7116_s26, %s9474_s26   ;;  %s7059_s25 = sphi %s7114_s25, %s9473_s25   ;;  %s7055_s24 = sphi %s7112_s24, %s9472_s24  }
   0x4   : > { %s7137_s30 = sadd.s32 1, %s7067_s27   ;;  %s179_s8 = sadd.s32 1, %s7063_s26 }
   0x5   : > { %s176_s9 = ssub.s32 %s7067_s27, %s7137_s30  ;;  %p189_p0 = scmp.ne.s32.totalorder %s7063_s26, %s7059_s25 }
   0x6   : > { %p177_p1 = scmp.eq.s32.totalorder %s176_s9, 0  ;;  %p190_p2 = scmp.eq.s32.totalorder %s7133_s28, 3 }
   0x7   : > { %p195_p3 = scmp.ne.s32.totalorder %s7059_s25, %s7055_s24  ;;  %p196_p4 = scmp.eq.s32.totalorder %s4719_s29, 3 }
   0x8   : > { %s7148_s10 = scalar_select %p177_p1, %s7063_s26, %s179_s8  }
   0x9   : > { %p7150_p5 = por %p190_p2, %p189_p0  ;;  %p7154_p6 = por %p196_p4, %p195_p3 }
   0xa   : > { %p4722_p7 = scmp.ge.s32.totalorder %s7067_s27, 1  ;;  %p241_p8 = scmp.lt.s32.totalorder %s7067_s27, 5 }
   0xc   : > { %p242_p9 = pnand %p4722_p7, %p241_p8 }
   0xe   : > { %245 = sbr.rel (%p242_p9) target bundleno = 1186 (0x4a2), region = 48 }
  0x15   : > { %v296_v0 = vld [vmem:[%s9188_s4] sm:$0xff]  ;;  %v297_v1 = vld [vmem:[%s9188_s4 + $0x8] sm:$0xff]  ;;  %s4724_s17 = sshll.u32 %s7133_s28, 4  ;;  %vm298_vm0 = vcmask 130048   ;;  %s270_s8 = sand.u32 1, %s7059_s25  }
  0x16   : > { %v348_v2 = vand.u32 4294901760, %v296_v0  ;;  %v351_v3 = vand.u32 4294901760, %v297_v1  ;;  %p274_p10 = scmp.lt.s32.totalorder %s4724_s17, 63  ;;  %s4723_s9 = sshll.u32 %s270_s8, 7 }
  0x17   : > { %s9114_s15 = scalar_lea.vmem [#allocation2], %s4723_s9  ;;  %s4784_s16 = sshll.u32 %s7133_s28, 11 }
  0x18   : > { %v7167_v4 = vpack.c.bf16 %v351_v3, %v348_v2  ;;  %v576_v5 = vsub.f32 %v296_v0, %v348_v2  ;;  %v583_v6 = vsub.f32 %v297_v1, %v351_v3  ;;  %s9477_s17 = smov (!%p274_p10, %s4724_s17), 63  ;;  %s9135_s19 = scalar_lea.hbm %s9191_s7, %s4784_s16 }
  0x19   : > { %s4725_s18 = sshll.u32 %s9477_s17, 3  ;;  %s9143_s28 = scalar_lea.sflag [#allocation3], %s270_s8 }
  0x1a   : > { %v7169_v7 = vpack.c.bf16 %v583_v6, %v576_v5  ;;  %6256 = vmatprep.subr.bf16.mxu1 %v7167_v4  ;;  %v577_v8 = vand.u32 4294901760, %v576_v5  ;;  %v584_v9 = vand.u32 4294901760, %v583_v6  ;;  %s7175_s21 = scalar_lea.vmem %s9184_s0, %s4725_s18  ;;  %s7069_s22 = smov [#allocation2]  }
  0x1b   : > { %6258 = vmatpush3.bf16.msra.mxu1 %v7167_v4  ;;  %v7180_v10 = vld [vmem:[%s7175_s21] sm:$0xff]  ;;  %v7183_v11 = vld [vmem:[%s7175_s21 + $0x8] sm:$0xff]  ;;  %v7186_v12 = vld [vmem:[%s7175_s21 + $0x10] sm:$0xff]  ;;  %s7009_s23 = sshll.u32 %s7069_s22, 4  ;;  %s7010_s23 = int_to_ptr.vmem [resolvable:$false] %s7009_s23 }
  0x1c   : > { %6264 = vmatprep.subr.bf16.mxu0 %v7169_v7  ;;  %v578_v13 = vsub.f32 %v576_v5, %v577_v8  ;;  %v585_v14 = vsub.f32 %v583_v6, %v584_v9  ;;  %v300_v15 = vsel %vm298_vm0, %v7180_v10, 0  ;;  %v303_v16 = vsel %vm298_vm0, %v7183_v11, 0  ;;  %v7196_v18 = vld [vmem:[%s7175_s21 + $0x18] sm:$0xff]  ;;  %v7199_v19 = vld [vmem:[%s7175_s21 + $0x20] sm:$0xff]  ;;  %v7212_v25 = vld [vmem:[%s7175_s21 + $0x28] sm:$0xff]  ;;  %s7011_s29 = scalar_lea.vmem %s7010_s23, 4096 }
  0x1d   : > { %6266 = vmatpush3.bf16.msra.mxu0 %v7169_v7  ;;  %v306_v17 = vsel %vm298_vm0, %v7186_v12, 0  ;;  %v7201_v20 = vpack.c.bf16 %v584_v9, %v577_v8  ;;  %v7203_v21 = vand.u32 4294901760, %v300_v15  ;;  %v7205_v22 = vand.u32 4294901760, %v303_v16  ;;  %v7215_v26 = vld [vmem:[%s7175_s21 + $0x30] sm:$0xff]  ;;  %v7234_v35 = vld [vmem:[%s7175_s21 + $0x38] sm:$0xff]  ;;  %v7282_v56 = vld [vmem:[%s7175_s21 + $0x40] sm:$0xff] }
  0x1e   : > { %v7207_v23 = vand.u32 4294901760, %v306_v17  ;;  %v309_v24 = vsel %vm298_vm0, %v7196_v18, 0  ;;  %6268 = vmatprep.subr.bf16.mxu0 %v7167_v4  ;;  %v579_v28 = vand.u32 4294901760, %v578_v13  ;;  %v586_v29 = vand.u32 4294901760, %v585_v14  ;;  %v7285_v57 = vld [vmem:[%s7175_s21 + $0x48] sm:$0xff]  ;;  %v7298_v1 = vld [vmem:[%s7175_s21 + $0x50] sm:$0xff] }
  0x1f   : > { %v7218_v27 = vand.u32 4294901760, %v309_v24  ;;  %v312_v30 = vsel %vm298_vm0, %v7199_v19, 0  ;;  %v7223_v31 = vsub.f32 %v300_v15, %v7203_v21  ;;  %v7226_v32 = vsub.f32 %v303_v16, %v7205_v22  ;;  %v7301_v2 = vld [vmem:[%s7175_s21 + $0x58] sm:$0xff]  ;;  %v7320_v16 = vld [vmem:[%s7175_s21 + $0x60] sm:$0xff] }
  0x20   : > { %v7229_v33 = vsub.f32 %v306_v17, %v7207_v23  ;;  %v7231_v34 = vand.u32 4294901760, %v312_v30  ;;  %v6259_v37 = vpack.c.bf16 %v586_v29, %v579_v28  ;;  %v315_v38 = vsel %vm298_vm0, %v7212_v25, 0  ;;  %v7323_v17 = vld [vmem:[%s7175_s21 + $0x68] sm:$0xff] }
  0x21   : > { %v7237_v36 = vsub.f32 %v309_v24, %v7218_v27  ;;  %v318_v39 = vsel %vm298_vm0, %v7215_v26, 0  ;;  %5391 = vmatprep.mubr.f32.mxu0 %v7223_v31  ;;  %v416_v40 = vand.u32 4294901760, %v7223_v31  ;;  %v9198_v41 = vand.u32 4294901760, %v7226_v32  ;;  %9317 = vst [vmem:[#allocation5_spill] sm:$0xff] %v7323_v17 }
  0x22   : > { %v7247_v42 = vsub.f32 %v312_v30, %v7231_v34  ;;  %v7249_v43 = vand.u32 4294901760, %v315_v38  ;;  %5392 = vmatmul.mubr.f32.vlgmr.msra.gmra.mrb[0].mxu0 %v7226_v32  ;;  %6260 = vmatprep.subr.bf16.mxu1 %v6259_v37  ;;  %v9197_v44 = vand.u32 4294901760, %v7229_v33  ;;  %v7254_v46 = vand.u32 4294901760, %v318_v39 }
  0x23   : > { %v9196_v45 = vand.u32 4294901760, %v7237_v36  ;;  %v321_v47 = vsel %vm298_vm0, %v7234_v35, 0  ;;  %5394 = vmatprep.mubr.f32.mxu0 %v7229_v33  ;;  %v417_v48 = vsub.f32 %v7223_v31, %v416_v40  ;;  %v427_v49 = vsub.f32 %v7226_v32, %v9198_v41  ;;  %6270 = vmatpush3.bf16.msra.mxu0 %v7167_v4 }
  0x24   : > { %v7266_v50 = vsub.f32 %v315_v38, %v7249_v43  ;;  %v7268_v51 = vand.u32 4294901760, %v321_v47  ;;  %v437_v52 = vsub.f32 %v7229_v33, %v9197_v44  ;;  %v7278_v54 = vsub.f32 %v318_v39, %v7254_v46  ;;  %6272 = vmatprep.subr.bf16.mxu0 %v7201_v20 }
  0x25   : > { %v447_v53 = vsub.f32 %v7237_v36, %v9196_v45  ;;  %v9195_v55 = vand.u32 4294901760, %v7247_v42  ;;  %v418_v58 = vand.u32 4294901760, %v417_v48  ;;  %v428_v59 = vand.u32 4294901760, %v427_v49  ;;  %v7342_v48 = vld [vmem:[%s7175_s21 + $0x70] sm:$0xff]  ;;  %v7345_v49 = vld [vmem:[%s7175_s21 + $0x78] sm:$0xff] }
  0x26   : > { %v7289_v60 = vsub.f32 %v321_v47, %v7268_v51  ;;  %v9194_v61 = vand.u32 4294901760, %v7266_v50  ;;  %5395 = vmatmul.mubr.f32.gmra.mrb[2].mxu0 %v7237_v36  ;;  %v438_v62 = vand.u32 4294901760, %v437_v52  ;;  %v9193_v0 = vand.u32 4294901760, %v7278_v54  ;;  %9318 = vst [vmem:[#allocation6_spill] sm:$0xff] %v7342_v48  ;;  %9319 = vst [vmem:[#allocation7_spill] sm:$0xff] %v7345_v49 }
  0x27   : > { %v457_v63 = vsub.f32 %v7247_v42, %v9195_v55  ;;  %5335 = vmatprep.mubr.f32.mxu1 %v418_v58  ;;  %5397 = vmatprep.mubr.f32.mxu0 %v7247_v42  ;;  %v324_v6 = vsel %vm298_vm0, %v7282_v56, 0  ;;  %v327_v8 = vsel %vm298_vm0, %v7285_v57, 0  ;;  %v448_v9 = vand.u32 4294901760, %v447_v53 }
  0x28   : > { %v467_v3 = vsub.f32 %v7266_v50, %v9194_v61  ;;  %v9192_v5 = vand.u32 4294901760, %v7289_v60  ;;  %5336 = vmatmul.mubr.f32.vlgmr.msra.gmra.mrb[0].mxu1 %v428_v59  ;;  %v477_v13 = vsub.f32 %v7278_v54, %v9193_v0  ;;  %v7315_v14 = vand.u32 4294901760, %v324_v6 }
  0x29   : > { %v7317_v15 = vand.u32 4294901760, %v327_v8  ;;  %6262 = vmatpush3.bf16.msra.mxu1 %v6259_v37  ;;  %5338 = vmatprep.mubr.f32.mxu1 %v438_v62  ;;  %v458_v24 = vand.u32 4294901760, %v457_v63  ;;  %v330_v29 = vsel %vm298_vm0, %v7298_v1, 0  ;;  %v333_v30 = vsel %vm298_vm0, %v7301_v2, 0 }
  0x2a   : > { %v468_v28 = vand.u32 4294901760, %v467_v3  ;;  %5398 = vmatmul.mubr.f32.gmra.mrb[4].mxu0 %v7266_v50  ;;  %v487_v38 = vsub.f32 %v7289_v60, %v9192_v5  ;;  %v7334_v39 = vsub.f32 %v324_v6, %v7315_v14  ;;  %v7339_v47 = vand.u32 4294901760, %v330_v29  ;;  %6675 = vmatprep.subr.bf16.mxu1 %v7169_v7 }
  0x2b   : > { %v7337_v37 = vsub.f32 %v327_v8, %v7317_v15  ;;  %5400 = vmatprep.mubr.f32.mxu0 %v7278_v54  ;;  %v478_v52 = vand.u32 4294901760, %v477_v13  ;;  %v7349_v53 = vand.u32 4294901760, %v333_v30  ;;  %v336_v58 = vsel %vm298_vm0, %v7320_v16, 0 }
  0x2c   : > { %v339_v59 = vsel %vm298_vm0, %v7323_v17, 0  ;;  %5339 = vmatmul.mubr.f32.gmra.mrb[2].mxu1 %v448_v9  ;;  %v496_v62 = vand.u32 4294901760, %v7334_v39  ;;  %v7358_v3 = vsub.f32 %v330_v29, %v7339_v47  ;;  %v7360_v6 = vand.u32 4294901760, %v336_v58 }
  0x2d   : > { %v506_v63 = vand.u32 4294901760, %v7337_v37  ;;  %5341 = vmatprep.mubr.f32.mxu1 %v458_v24  ;;  %v7363_v8 = vsub.f32 %v333_v30, %v7349_v53  ;;  %v7365_v13 = vand.u32 4294901760, %v339_v59  ;;  %v342_v5 = vsel %vm298_vm0, %v7342_v48, 0 }
  0x2e   : > { %v345_v9 = vsel %vm298_vm0, %v7345_v49, 0  ;;  %5401 = vmatmul.mubr.f32.gmra.mrb[6].mxu0 %v7289_v60  ;;  %v497_v0 = vsub.f32 %v7334_v39, %v496_v62  ;;  %v516_v29 = vand.u32 4294901760, %v7358_v3  ;;  %v7375_v61 = vsub.f32 %v336_v58, %v7360_v6 }
  0x2f   : > { %5419 = vmatprep.mubr.f32.mxu0 %v416_v40  ;;  %v488_v24 = vand.u32 4294901760, %v487_v38  ;;  %v7379_v30 = vand.u32 4294901760, %v342_v5  ;;  %v507_v55 = vsub.f32 %v7337_v37, %v506_v63  ;;  %v526_v45 = vand.u32 4294901760, %v7363_v8 }
  0x30   : > { %5342 = vmatmul.mubr.f32.gmra.mrb[4].mxu1 %v468_v28  ;;  %v7384_v44 = vsub.f32 %v339_v59, %v7365_v13  ;;  %v7386_v41 = vand.u32 4294901760, %v345_v9  ;;  %v498_v49 = vand.u32 4294901760, %v497_v0  ;;  %v517_v58 = vsub.f32 %v7358_v3, %v516_v29 }
  0x31   : > { %5344 = vmatprep.mubr.f32.mxu1 %v478_v52  ;;  %v536_v31 = vand.u32 4294901760, %v7375_v61  ;;  %v7391_v40 = vsub.f32 %v342_v5, %v7379_v30  ;;  %v9320_v28 = vand.u32 4294901760, %v7226_v32  ;;  %v9321_v38 = vand.u32 4294901760, %v7229_v33 }
  0x32   : > { %v508_v59 = vand.u32 4294901760, %v507_v55  ;;  %v527_v52 = vsub.f32 %v7363_v8, %v526_v45  ;;  %v546_v0 = vand.u32 4294901760, %v7384_v44  ;;  %v7401_v48 = vsub.f32 %v345_v9, %v7386_v41 }
  0x33   : > { %5420 = vmatmul.mubr.f32.vlgmr.msra.gmra.mrb[0].mxu0 %v9320_v28  ;;  %v518_v5 = vand.u32 4294901760, %v517_v58  ;;  %v537_v32 = vsub.f32 %v7375_v61, %v536_v31  ;;  %v556_v33 = vand.u32 4294901760, %v7391_v40  ;;  %v9322_v28 = vand.u32 4294901760, %v7237_v36 }
  0x34   : > { %5422 = vmatprep.mubr.f32.mxu0 %v9321_v38  ;;  %6274 = vmatpush3.bf16.msra.mxu0 %v7201_v20  ;;  %v9323_v20 = vand.u32 4294901760, %v7247_v42  ;;  %v528_v55 = vand.u32 4294901760, %v527_v52  ;;  %v566_v9 = vand.u32 4294901760, %v7401_v48  ;;  %v9324_v58 = vand.u32 4294901760, %v7266_v50  ;;  %v1451_v50 = vld [vmem:[%s9185_s1] sm:$0xff] }
  0x35   : > { %5345 = vmatmul.mubr.f32.gmra.mrb[6].mxu1 %v488_v24  ;;  %6276 = vmatprep.subr.bf16.mxu0 %v7167_v4  ;;  %v547_v24 = vsub.f32 %v7384_v44, %v546_v0  ;;  %v538_v38 = vand.u32 4294901760, %v537_v32  ;;  %v9325_v17 = vand.u32 4294901760, %v7278_v54  ;;  %v9326_v52 = vand.u32 4294901760, %v7289_v60  ;;  %v1452_v54 = vld [vmem:[%s9185_s1 + $0x18] sm:$0xff] }
  0x36   : > { %5347 = vmatprep.mubr.f32.mxu1 %v498_v49  ;;  %v557_v49 = vsub.f32 %v7391_v40, %v556_v33  ;;  %v567_v42 = vsub.f32 %v7401_v48, %v566_v9  ;;  %v6279_v60 = vpack.c.bf16 %v1452_v54, %v1451_v50 }
  0x37   : > { %5423 = vmatmul.mubr.f32.gmra.mrb[2].mxu0 %v9322_v28  ;;  %v548_v36 = vand.u32 4294901760, %v547_v24 }
  0x38   : > { %5425 = vmatprep.mubr.f32.mxu0 %v9323_v20 }
  0x39   : > { %5348 = vmatmul.mubr.f32.gmra.mrb[8].mxu1 %v508_v59  ;;  %v558_v59 = vand.u32 4294901760, %v557_v49 }
  0x3a   : > { %5350 = vmatprep.mubr.f32.mxu1 %v518_v5  ;;  %v568_v5 = vand.u32 4294901760, %v567_v42 }
  0x3b   : > { %5426 = vmatmul.mubr.f32.gmra.mrb[4].mxu0 %v9324_v58 }
  0x3c   : > { %5428 = vmatprep.mubr.f32.mxu0 %v9325_v17 }
  0x3d   : > { %5351 = vmatmul.mubr.f32.gmra.mrb[10].mxu1 %v528_v55 }
  0x3e   : > { %5353 = vmatprep.mubr.f32.mxu1 %v538_v38 }
  0x3f   : > { %5429 = vmatmul.mubr.f32.gmra.mrb[6].mxu0 %v9326_v52 }
  0x40   : > { %5431 = vmatprep.mubr.f32.mxu0 %v496_v62 }
  0x41   : > { %5354 = vmatmul.mubr.f32.gmra.mrb[12].mxu1 %v548_v36 }
  0x42   : > { %5356 = vmatprep.mubr.f32.mxu1 %v558_v59 }
  0x43   : > { %5432 = vmatmul.mubr.f32.gmra.mrb[8].mxu0 %v506_v63  ;;  %v7629_v63 = vld [vmem:[%s9189_s5 + $0x60] sm:$0xff] }
  0x44   : > { %5434 = vmatprep.mubr.f32.mxu0 %v516_v29 }
  0x45   : > { %5357 = vmatmul.mubr.f32.gmra.mrb[14].mxu1 %v568_v5 }
  0x46   : > { %5363 = vmatprep.mubr.f32.mxu1 %v7203_v21 }
  0x47   : > { %5435 = vmatmul.mubr.f32.gmra.mrb[10].mxu0 %v526_v45 }
  0x48   : > { %5437 = vmatprep.mubr.f32.mxu0 %v536_v31  ;;  %v7653_v31 = vld [vmem:[%s9189_s5 + $0x70] sm:$0xff] }
  0x49   : > { %5364 = vmatmul.mubr.f32.vlgmr.msra.gmra.mrb[0].mxu1 %v7205_v22 }
  0x4a   : > { %6676 = vmatpush3.bf16.msra.mxu1 %v7169_v7  ;;  %5366 = vmatprep.mubr.f32.mxu1 %v7207_v23  ;;  %v1622_v7 = vld [vmem:[%s9185_s1 + $0x20] sm:$0xff] }
  0x4b   : > { %5438 = vmatmul.mubr.f32.gmra.mrb[12].mxu0 %v546_v0  ;;  %6280 = vmatprep.subr.bf16.mxu1 %v6279_v60  ;;  %v1889_v0 = vand.u32 4294901760, %v7653_v31 }
  0x4c   : > { %5440 = vmatprep.mubr.f32.mxu0 %v556_v33 }
  0x4d   : > { %5367 = vmatmul.mubr.f32.gmra.mrb[2].mxu1 %v7218_v27 }
  0x4e   : > { %5369 = vmatprep.mubr.f32.mxu1 %v7231_v34 }
  0x4f   : > { %5441 = vmatmul.mubr.f32.gmra.mrb[14].mxu0 %v566_v9 }
  0x50   : > { %5447 = vmatprep.mubr.f32.mxu0 %v7203_v21 }
  0x51   : > { %5370 = vmatmul.mubr.f32.gmra.mrb[4].mxu1 %v7249_v43 }
  0x52   : > { %5372 = vmatprep.mubr.f32.mxu1 %v7254_v46 }
  0x53   : > { %5448 = vmatmul.mubr.f32.vlgmr.msra.gmra.mrb[0].mxu0 %v7205_v22 }
  0x54   : > { %5450 = vmatprep.mubr.f32.mxu0 %v7207_v23  ;;  %6278 = vmatpush3.bf16.msra.mxu0 %v7167_v4  ;;  %v1621_v4 = vld [vmem:[%s9185_s1 + $0x8] sm:$0xff] }
  0x55   : > { %5373 = vmatmul.mubr.f32.gmra.mrb[6].mxu1 %v7268_v51  ;;  %v6283_v45 = vpack.c.bf16 %v1622_v7, %v1621_v4 }
  0x56   : > { %5375 = vmatprep.mubr.f32.mxu1 %v7315_v14 }
  0x57   : > { %5451 = vmatmul.mubr.f32.gmra.mrb[2].mxu0 %v7218_v27 }
  0x58   : > { %5453 = vmatprep.mubr.f32.mxu0 %v7231_v34 }
  0x59   : > { %5376 = vmatmul.mubr.f32.gmra.mrb[8].mxu1 %v7317_v15 }
  0x5a   : > { %5378 = vmatprep.mubr.f32.mxu1 %v7339_v47 }
  0x5b   : > { %5454 = vmatmul.mubr.f32.gmra.mrb[4].mxu0 %v7249_v43 }
  0x5c   : > { %5456 = vmatprep.mubr.f32.mxu0 %v7254_v46 }
  0x5d   : > { %5379 = vmatmul.mubr.f32.gmra.mrb[10].mxu1 %v7349_v53 }
  0x5e   : > { %5381 = vmatprep.mubr.f32.mxu1 %v7360_v6 }
  0x5f   : > { %5457 = vmatmul.mubr.f32.gmra.mrb[6].mxu0 %v7268_v51 }
  0x60   : > { %5459 = vmatprep.mubr.f32.mxu0 %v7315_v14 }
  0x61   : > { %5382 = vmatmul.mubr.f32.gmra.mrb[12].mxu1 %v7365_v13 }
  0x62   : > { %5384 = vmatprep.mubr.f32.mxu1 %v7379_v30 }
  0x63   : > { %5460 = vmatmul.mubr.f32.gmra.mrb[8].mxu0 %v7317_v15 }
  0x64   : > { %5462 = vmatprep.mubr.f32.mxu0 %v7339_v47 }
  0x65   : > { %5385 = vmatmul.mubr.f32.gmra.mrb[14].mxu1 %v7386_v41 }
  0x66   : > { %5403 = vmatprep.mubr.f32.mxu1 %v7334_v39 }
  0x67   : > { %5463 = vmatmul.mubr.f32.gmra.mrb[10].mxu0 %v7349_v53 }
  0x68   : > { %5465 = vmatprep.mubr.f32.mxu0 %v7360_v6 }
  0x69   : > { %5404 = vmatmul.mubr.f32.vlgmr.msra.gmra.mrb[8].mxu1 %v7337_v37  ;;  %v7613_v37 = vld [vmem:[%s9189_s5 + $0x50] sm:$0xff] }
  0x6a   : > { %6282 = vmatpush3.bf16.msra.mxu1 %v6279_v60  ;;  %5406 = vmatprep.mubr.f32.mxu1 %v7358_v3  ;;  %v7634_v3 = vld [vmem:[%s9189_s5 + $0x68] sm:$0xff] }
  0x6b   : > { %5466 = vmatmul.mubr.f32.gmra.mrb[12].mxu0 %v7365_v13  ;;  %6284 = vmatprep.subr.bf16.mxu1 %v6283_v45 }
  0x6c   : > { %5468 = vmatprep.mubr.f32.mxu0 %v7379_v30 }
  0x6d   : > { %5407 = vmatmul.mubr.f32.gmra.mrb[10].mxu1 %v7363_v8  ;;  %v1886_v8 = vand.u32 4294901760, %v7634_v3 }
  0x6e   : > { %5409 = vmatprep.mubr.f32.mxu1 %v7375_v61 }
  0x6f   : > { %5469 = vmatmul.mubr.f32.gmra.mrb[14].mxu0 %v7386_v41 }
  0x70   : > { %5475 = vmatprep.mubr.f32.mxu0 %v7203_v21  ;;  %v9327_v21 = vld [vmem:[#allocation5_spill] sm:$0xff] }
  0x71   : > { %5410 = vmatmul.mubr.f32.gmra.mrb[12].mxu1 %v7384_v44 }
  0x72   : > { %5412 = vmatprep.mubr.f32.mxu1 %v7391_v40  ;;  %v7658_v40 = vld [vmem:[%s9189_s5 + $0x78] sm:$0xff] }
  0x73   : > { %5476 = vmatmul.mubr.f32.vlgmr.msra.gmra.mrb[0].mxu0 %v7205_v22  ;;  %v9328_v22 = vld [vmem:[#allocation6_spill] sm:$0xff]  ;;  %v1892_v32 = vand.u32 4294901760, %v7658_v40 }
  0x74   : > { %5478 = vmatprep.mubr.f32.mxu0 %v7207_v23  ;;  %v9329_v23 = vld [vmem:[#allocation7_spill] sm:$0xff] }
  0x75   : > { %5413 = vmatmul.mubr.f32.gmra.mrb[14].mxu1 %v7401_v48  ;;  %v1877_v48 = vand.u32 4294901760, %v7613_v37  ;;  %v7670_v20 = vpack.c.bf16 %v1892_v32, %v1889_v0 }
  0x76   : > { %5503 = vmatprep.mubr.msk.f32.mxu1 %vm298_vm0, %v7180_v10 }
  0x77   : > { %5479 = vmatmul.mubr.f32.gmra.mrb[2].mxu0 %v7218_v27  ;;  %9336 = vst [vmem:[#allocation11_spill] sm:$0xff] %v7670_v20 }
  0x78   : > { %5481 = vmatprep.mubr.f32.mxu0 %v7231_v34 }
  0x79   : > { %5504 = vmatmul.mubr.msk.f32.vlgmr.msra.gmra.mrb[16].mxu1 %vm298_vm0, %v7183_v11 }
  0x7a   : > { %6286 = vmatpush3.bf16.msra.mxu1 %v6283_v45  ;;  %5506 = vmatprep.mubr.msk.f32.mxu1 %vm298_vm0, %v7186_v12 }
  0x7b   : > { %5482 = vmatmul.mubr.f32.gmra.mrb[4].mxu0 %v7249_v43  ;;  %v1828_v43 = vld [vmem:[%s9189_s5 + $0x28] sm:$0xff] }
  0x7c   : > { %5484 = vmatprep.mubr.f32.mxu0 %v7254_v46  ;;  %v1862_v46 = vand.u32 4294901760, %v1828_v43 }
  0x7d   : > { %5507 = vmatmul.mubr.msk.f32.gmra.mrb[18].mxu1 %vm298_vm0, %v7196_v18 }
  0x7e   : > { %5509 = vmatprep.mubr.msk.f32.mxu1 %vm298_vm0, %v7199_v19  ;;  %v7693_v50 = vsub.f32 %v1828_v43, %v1862_v46 }
  0x7f   : > { %5485 = vmatmul.mubr.f32.gmra.mrb[6].mxu0 %v7268_v51 }
  0x80   : > { %5487 = vmatprep.mubr.f32.mxu0 %v7315_v14  ;;  %v7597_v14 = vld [vmem:[%s9189_s5 + $0x40] sm:$0xff]  ;;  %9340 = vst [vmem:[#allocation15_spill] sm:$0xff] %v7693_v50  ;;  %v9215_v7 = vand.u32 4294901760, %v7693_v50 }
  0x81   : > { %5510 = vmatmul.mubr.msk.f32.gmra.mrb[20].mxu1 %vm298_vm0, %v7212_v25 }
  0x82   : > { %5512 = vmatprep.mubr.msk.f32.mxu1 %vm298_vm0, %v7215_v26 }
  0x83   : > { %5488 = vmatmul.mubr.f32.gmra.mrb[8].mxu0 %v7317_v15  ;;  %v7602_v15 = vld [vmem:[%s9189_s5 + $0x48] sm:$0xff] }
  0x84   : > { %5490 = vmatprep.mubr.f32.mxu0 %v7339_v47  ;;  %v1874_v17 = vand.u32 4294901760, %v7602_v15  ;;  %v7618_v47 = vld [vmem:[%s9189_s5 + $0x58] sm:$0xff] }
  0x85   : > { %5513 = vmatmul.mubr.msk.f32.gmra.mrb[22].mxu1 %vm298_vm0, %v7234_v35 }
  0x86   : > { %5515 = vmatprep.mubr.msk.f32.mxu1 %vm298_vm0, %v7282_v56 }
  0x87   : > { %5491 = vmatmul.mubr.f32.gmra.mrb[10].mxu0 %v7349_v53  ;;  %v1880_v53 = vand.u32 4294901760, %v7618_v47 }
  0x88   : > { %5493 = vmatprep.mubr.f32.mxu0 %v7360_v6  ;;  %v1883_v6 = vand.u32 4294901760, %v7629_v63 }
  0x89   : > { %5516 = vmatmul.mubr.msk.f32.gmra.mrb[24].mxu1 %vm298_vm0, %v7285_v57  ;;  %v7624_v62 = vpack.c.bf16 %v1880_v53, %v1877_v48 }
  0x8a   : > { %5518 = vmatprep.mubr.msk.f32.mxu1 %vm298_vm0, %v7298_v1 }
  0x8b   : > { %5494 = vmatmul.mubr.f32.gmra.mrb[12].mxu0 %v7365_v13  ;;  %9332 = vst [vmem:[#allocation7_spill] sm:$0xff] %v7624_v62  ;;  %v7644_v13 = vpack.c.bf16 %v1886_v8, %v1883_v6 }
  0x8c   : > { %5496 = vmatprep.mubr.f32.mxu0 %v7379_v30 }
  0x8d   : > { %5519 = vmatmul.mubr.msk.f32.gmra.mrb[26].mxu1 %vm298_vm0, %v7301_v2  ;;  %9333 = vst [vmem:[#allocation8_spill] sm:$0xff] %v7644_v13 }
  0x8e   : > { %5521 = vmatprep.mubr.msk.f32.mxu1 %vm298_vm0, %v7320_v16 }
  0x8f   : > { %5497 = vmatmul.mubr.f32.gmra.mrb[14].mxu0 %v7386_v41  ;;  %v1827_v41 = vld [vmem:[%s9189_s5 + $0x20] sm:$0xff] }
  0x90   : > { %5895 = vmatprep.mubr.msk.f32.mxu0 %vm298_vm0, %v7180_v10  ;;  %v1859_v44 = vand.u32 4294901760, %v1827_v41 }
  0x91   : > { %5522 = vmatmul.mubr.msk.f32.gmra.mrb[28].mxu1 %vm298_vm0, %v9327_v21 }
  0x92   : > { %5524 = vmatprep.mubr.msk.f32.mxu1 %vm298_vm0, %v9328_v22  ;;  %v7582_v51 = vpack.c.bf16 %v1862_v46, %v1859_v44  ;;  %v7691_v5 = vsub.f32 %v1827_v41, %v1859_v44  ;;  %v7727_v44 = vsub.f32 %v7602_v15, %v1874_v17 }
  0x94   : > { %9339 = vst [vmem:[#allocation14_spill] sm:$0xff] %v7691_v5  ;;  %v9216_v4 = vand.u32 4294901760, %v7691_v5  ;;  %9344 = vst [vmem:[#allocation19_spill] sm:$0xff] %v7727_v44 }
  0x95   : > { %5525 = vmatmul.mubr.msk.f32.gmra.mrb[30].mxu1 %vm298_vm0, %v9329_v23 }
  0x96   : > { %5531 = vmatprep.mubr.msk.f32.mxu1 %vm298_vm0, %v7180_v10  ;;  %v1823_v10 = vld [vmem:[%s9189_s5] sm:$0xff] }
  0x99   : > { %5532 = vmatmul.mubr.msk.f32.vlgmr.msra.gmra.mrb[32].mxu1 %vm298_vm0, %v7183_v11  ;;  %v1824_v11 = vld [vmem:[%s9189_s5 + $0x8] sm:$0xff] }
  0x9a   : > { %5534 = vmatprep.mubr.msk.f32.mxu1 %vm298_vm0, %v7186_v12  ;;  %v1847_v12 = vand.u32 4294901760, %v1823_v10 }
  0x9c   : > { %v7646_v29 = vsub.f32 %v1823_v10, %v1847_v12 }
  0x9d   : > { %5535 = vmatmul.mubr.msk.f32.gmra.mrb[34].mxu1 %vm298_vm0, %v7196_v18  ;;  %v1850_v18 = vand.u32 4294901760, %v1824_v11 }
  0x9e   : > { %5537 = vmatprep.mubr.msk.f32.mxu1 %vm298_vm0, %v7199_v19  ;;  %9334 = vst [vmem:[#allocation9_spill] sm:$0xff] %v7646_v29  ;;  %v9220_v33 = vand.u32 4294901760, %v7646_v29 }
  0x9f   : > { %v7562_v19 = vpack.c.bf16 %v1850_v18, %v1847_v12  ;;  %v7648_v30 = vsub.f32 %v1824_v11, %v1850_v18 }
  0xa0   : > { %v2091_v55 = vsub.f32 %v7646_v29, %v9220_v33 }
  0xa1   : > { %5538 = vmatmul.mubr.msk.f32.gmra.mrb[36].mxu1 %vm298_vm0, %v7212_v25  ;;  %v1825_v25 = vld [vmem:[%s9189_s5 + $0x10] sm:$0xff]  ;;  %6288 = vmatprep.subr.bf16.mxu1 %v7562_v19  ;;  %9335 = vst [vmem:[#allocation10_spill] sm:$0xff] %v7648_v30  ;;  %v9219_v28 = vand.u32 4294901760, %v7648_v30 }
  0xa2   : > { %5540 = vmatprep.mubr.msk.f32.mxu1 %vm298_vm0, %v7215_v26  ;;  %v1826_v26 = vld [vmem:[%s9189_s5 + $0x18] sm:$0xff]  ;;  %v1853_v27 = vand.u32 4294901760, %v1825_v25  ;;  %6290 = vmatpush3.bf16.msra.mxu1 %v7562_v19  ;;  %v2092_v49 = vand.u32 4294901760, %v2091_v55 }
  0xa3   : > { %v1856_v34 = vand.u32 4294901760, %v1826_v26  ;;  %v2098_v24 = vsub.f32 %v7648_v30, %v9219_v28 }
  0xa4   : > { %v7678_v9 = vsub.f32 %v1825_v25, %v1853_v27 }
  0xa5   : > { %5541 = vmatmul.mubr.msk.f32.gmra.mrb[38].mxu1 %vm298_vm0, %v7234_v35  ;;  %v7572_v35 = vpack.c.bf16 %v1856_v34, %v1853_v27  ;;  %v7680_v38 = vsub.f32 %v1826_v26, %v1856_v34  ;;  %v2099_v58 = vand.u32 4294901760, %v2098_v24  ;;  %v7737_v24 = vsub.f32 %v7613_v37, %v1877_v48 }
  0xa6   : > { %5543 = vmatprep.mubr.msk.f32.mxu1 %vm298_vm0, %v7282_v56  ;;  %v1829_v56 = vld [vmem:[%s9189_s5 + $0x30] sm:$0xff]  ;;  %9337 = vst [vmem:[#allocation12_spill] sm:$0xff] %v7678_v9  ;;  %v9218_v36 = vand.u32 4294901760, %v7678_v9  ;;  %v7761_v48 = vsub.f32 %v7634_v3, %v1886_v8  ;;  %v7778_v3 = vsub.f32 %v7653_v31, %v1889_v0  ;;  %v7783_v8 = vsub.f32 %v7658_v40, %v1892_v32 }
  0xa7   : > { %6292 = vmatprep.subr.bf16.mxu1 %v7572_v35  ;;  %v1865_v61 = vand.u32 4294901760, %v1829_v56  ;;  %9338 = vst [vmem:[#allocation13_spill] sm:$0xff] %v7680_v38  ;;  %v9217_v42 = vand.u32 4294901760, %v7680_v38  ;;  %v7686_v59 = vpack.c.bf16 %v2099_v58, %v2092_v49  ;;  %9345 = vst [vmem:[#allocation20_spill] sm:$0xff] %v7737_v24  ;;  %v7799_v32 = vpack.c.bf16 %v7648_v30, %v7646_v29 }
  0xa8   : > { %6294 = vmatpush3.bf16.msra.mxu1 %v7572_v35  ;;  %v2105_v52 = vsub.f32 %v7678_v9, %v9218_v36  ;;  %9348 = vst [vmem:[#allocation23_spill] sm:$0xff] %v7761_v48  ;;  %9349 = vst [vmem:[#allocation24_spill] sm:$0xff] %v7778_v3 }
  0xa9   : > { %5544 = vmatmul.mubr.msk.f32.gmra.mrb[40].mxu1 %vm298_vm0, %v7285_v57  ;;  %v1830_v57 = vld [vmem:[%s9189_s5 + $0x38] sm:$0xff]  ;;  %6296 = vmatprep.subr.bf16.mxu1 %v7582_v51  ;;  %v2112_v54 = vsub.f32 %v7680_v38, %v9217_v42  ;;  %9350 = vst [vmem:[#allocation25_spill] sm:$0xff] %v7783_v8 }
  0xaa   : > { %5546 = vmatprep.mubr.msk.f32.mxu1 %vm298_vm0, %v7298_v1  ;;  %v1868_v1 = vand.u32 4294901760, %v1830_v57  ;;  %v2106_v60 = vand.u32 4294901760, %v2105_v52 }
  0xab   : > { %v2113_v45 = vand.u32 4294901760, %v2112_v54 }
  0xac   : > { %6298 = vmatpush3.bf16.msra.mxu1 %v7582_v51  ;;  %v7709_v10 = vsub.f32 %v1830_v57, %v1868_v1 }
  0xad   : > { %5547 = vmatmul.mubr.msk.f32.gmra.mrb[42].mxu1 %vm298_vm0, %v7301_v2  ;;  %v7592_v2 = vpack.c.bf16 %v1868_v1, %v1865_v61  ;;  %v7711_v11 = vpack.c.bf16 %v2113_v45, %v2106_v60 }
  0xae   : > { %5549 = vmatprep.mubr.msk.f32.mxu1 %vm298_vm0, %v7320_v16  ;;  %v1871_v16 = vand.u32 4294901760, %v7597_v14  ;;  %9342 = vst [vmem:[#allocation17_spill] sm:$0xff] %v7709_v10  ;;  %v9213_v26 = vand.u32 4294901760, %v7709_v10 }
  0xaf   : > { %9330 = vst [vmem:[#allocation5_spill] sm:$0xff] %v7592_v2  ;;  %6300 = vmatprep.subr.bf16.mxu1 %v7592_v2 }
  0xb0   : > { %6302 = vmatpush3.bf16.msra.mxu1 %v7592_v2  ;;  %v7608_v39 = vpack.c.bf16 %v1874_v17, %v1871_v16  ;;  %v2140_v41 = vsub.f32 %v7709_v10, %v9213_v26  ;;  %v7724_v43 = vsub.f32 %v7597_v14, %v1871_v16  ;;  %v7740_v14 = vsub.f32 %v7618_v47, %v1880_v53 }
  0xb1   : > { %5550 = vmatmul.mubr.msk.f32.gmra.mrb[44].mxu1 %vm298_vm0, %v9327_v21  ;;  %v2119_v21 = vsub.f32 %v7691_v5, %v9216_v4  ;;  %v9210_v17 = vand.u32 4294901760, %v7737_v24  ;;  %v7756_v47 = vsub.f32 %v7629_v63, %v1883_v6 }
  0xb2   : > { %5552 = vmatprep.mubr.msk.f32.mxu1 %vm298_vm0, %v9328_v22  ;;  %9331 = vst [vmem:[#allocation6_spill] sm:$0xff] %v7608_v39  ;;  %6304 = vmatprep.subr.bf16.mxu1 %v7608_v39  ;;  %v2126_v22 = vsub.f32 %v7693_v50, %v9215_v7  ;;  %9343 = vst [vmem:[#allocation18_spill] sm:$0xff] %v7724_v43  ;;  %v9212_v57 = vand.u32 4294901760, %v7724_v43  ;;  %v9209_v49 = vand.u32 4294901760, %v7740_v14 }
  0xb3   : > { %v2120_v12 = vand.u32 4294901760, %v2119_v21  ;;  %9346 = vst [vmem:[#allocation21_spill] sm:$0xff] %v7740_v14  ;;  %v2161_v52 = vsub.f32 %v7737_v24, %v9210_v17  ;;  %9347 = vst [vmem:[#allocation22_spill] sm:$0xff] %v7756_v47  ;;  %v9208_v45 = vand.u32 4294901760, %v7756_v47  ;;  %v9207_v21 = vand.u32 4294901760, %v7761_v48 }
  0xb4   : > { %6306 = vmatpush3.bf16.msra.mxu1 %v7608_v39  ;;  %v2127_v18 = vand.u32 4294901760, %v2126_v22  ;;  %v2147_v55 = vsub.f32 %v7724_v43, %v9212_v57  ;;  %v2168_v37 = vsub.f32 %v7740_v14, %v9209_v49 }
  0xb5   : > { %5553 = vmatmul.mubr.msk.f32.gmra.mrb[46].mxu1 %vm298_vm0, %v9329_v23  ;;  %6308 = vmatprep.subr.bf16.mxu1 %v7624_v62  ;;  %v7707_v23 = vsub.f32 %v1829_v56, %v1865_v61  ;;  %v2141_v56 = vand.u32 4294901760, %v2140_v41  ;;  %v9211_v61 = vand.u32 4294901760, %v7727_v44  ;;  %v2162_v54 = vand.u32 4294901760, %v2161_v52 }
  0xb6   : > { %v7715_v27 = vpack.c.bf16 %v2127_v18, %v2120_v12  ;;  %v2148_v16 = vand.u32 4294901760, %v2147_v55  ;;  %v2169_v60 = vand.u32 4294901760, %v2168_v37  ;;  %v2175_v63 = vsub.f32 %v7756_v47, %v9208_v45 }
  0xb7   : > { %9341 = vst [vmem:[#allocation16_spill] sm:$0xff] %v7707_v23  ;;  %v9214_v25 = vand.u32 4294901760, %v7707_v23  ;;  %v2154_v15 = vsub.f32 %v7727_v44, %v9211_v61  ;;  %v2182_v6 = vsub.f32 %v7761_v48, %v9207_v21  ;;  %v9205_v41 = vand.u32 4294901760, %v7783_v8 }
  0xb8   : > { %6310 = vmatpush3.bf16.msra.mxu1 %v7624_v62  ;;  %v7767_v22 = vpack.c.bf16 %v2169_v60, %v2162_v54  ;;  %v2176_v12 = vand.u32 4294901760, %v2175_v63  ;;  %v7807_v54 = vpack.c.bf16 %v7693_v50, %v7691_v5 }
  0xb9   : > { %6312 = vmatprep.subr.bf16.mxu1 %v7644_v13  ;;  %v2133_v34 = vsub.f32 %v7707_v23, %v9214_v25  ;;  %v2155_v58 = vand.u32 4294901760, %v2154_v15  ;;  %v2183_v18 = vand.u32 4294901760, %v2182_v6  ;;  %v2196_v31 = vsub.f32 %v7783_v8, %v9205_v41 }
  0xba   : > { %v7811_v6 = vpack.c.bf16 %v7709_v10, %v7707_v23 }
  0xbb   : > { %v2134_v46 = vand.u32 4294901760, %v2133_v34  ;;  %v7763_v53 = vpack.c.bf16 %v2155_v58, %v2148_v16  ;;  %v9206_v34 = vand.u32 4294901760, %v7778_v3  ;;  %v2197_v55 = vand.u32 4294901760, %v2196_v31 }
  0xbc   : > { %6314 = vmatpush3.bf16.msra.mxu1 %v7644_v13  ;;  %v7803_v58 = vpack.c.bf16 %v7680_v38, %v7678_v9  ;;  %v7819_v31 = vpack.c.bf16 %v7740_v14, %v7737_v24 }
  0xbd   : > { %6316 = vmatprep.subr.bf16.mxu1 %v7670_v20  ;;  %v7731_v1 = vpack.c.bf16 %v2141_v56, %v2134_v46  ;;  %v7787_v46 = vpack.c.bf16 %v2183_v18, %v2176_v12  ;;  %v2189_v56 = vsub.f32 %v7778_v3, %v9206_v34 }
  0xbf   : > { %v2190_v0 = vand.u32 4294901760, %v2189_v56  ;;  %v7815_v56 = vpack.c.bf16 %v7727_v44, %v7724_v43 }
  0xc0   : > { %6318 = vmatpush3.bf16.msra.mxu1 %v7670_v20 }
  0xc1   : > { %6320 = vmatprep.subr.bf16.mxu1 %v7686_v59  ;;  %v7795_v40 = vpack.c.bf16 %v2197_v55, %v2190_v0  ;;  %v7823_v0 = vpack.c.bf16 %v7761_v48, %v7756_v47  ;;  %v7827_v55 = vpack.c.bf16 %v7783_v8, %v7778_v3 }
 0x11c   : > { %v5365_v15 = vpop.f32.mrb[0].mxu1 }
 0x11d   : > { %v651_v16 = vpop.f32.mrb[1].mxu1 }
 0x120   : > { %v5368_v52 = vpop.f32.mrb[2].mxu1 }
 0x121   : > { %v663_v37 = vpop.f32.mrb[3].mxu1 }
 0x124   : > { %v5371_v60 = vpop.f32.mrb[4].mxu1 }
 0x125   : > { %v675_v63 = vpop.f32.mrb[5].mxu1 }
 0x128   : > { %v5374_v12 = vpop.f32.mrb[6].mxu1 }
 0x129   : > { %v687_v18 = vpop.f32.mrb[7].mxu1 }
 0x13c   : > { %v5405_v41 = vpop.f32.mrb[8].mxu1 }
 0x13d   : > { %v873_v34 = vpop.f32.mrb[9].mxu1 }
 0x140   : > { %v5408_v21 = vpop.f32.mrb[10].mxu1 }
 0x141   : > { %v887_v45 = vpop.f32.mrb[11].mxu1 }
 0x144   : > { %v5411_v49 = vpop.f32.mrb[12].mxu1 }
 0x145   : > { %v901_v17 = vpop.f32.mrb[13].mxu1 }
 0x146   : > { %v5477_v61 = vpop.f32.mrb[0].mxu0 }
 0x147   : > { %v6677_v57 = vadd.f32 %v5477_v61, %v5365_v15  ;;  %v1357_v26 = vpop.f32.mrb[1].mxu0 }
 0x148   : > { %v6678_v25 = vadd.f32 %v1357_v26, %v651_v16  ;;  %v5414_v7 = vpop.f32.mrb[14].mxu1 }
 0x149   : > { %v915_v4 = vpop.f32.mrb[15].mxu1 }
 0x14a   : > { %v5480_v42 = vpop.f32.mrb[2].mxu0 }
 0x14b   : > { %v7829_v36 = vadd.f32 %v5480_v42, %v5368_v52  ;;  %v1369_v28 = vpop.f32.mrb[3].mxu0 }
 0x14c   : > { %v7831_v33 = vadd.f32 %v1369_v28, %v663_v37  ;;  %v5505_v8 = vpop.f32.mrb[16].mxu1 }
 0x14d   : > { %v1519_v3 = vpop.f32.mrb[17].mxu1 }
 0x14e   : > { %v5483_v48 = vpop.f32.mrb[4].mxu0 }
 0x14f   : > { %v7833_v47 = vadd.f32 %v5483_v48, %v5371_v60  ;;  %v1381_v14 = vpop.f32.mrb[5].mxu0 }
 0x150   : > { %v7835_v24 = vadd.f32 %v1381_v14, %v675_v63  ;;  %v5508_v44 = vpop.f32.mrb[18].mxu1 }
 0x151   : > { %v1529_v61 = vpop.f32.mrb[19].mxu1 }
 0x152   : > { %v5486_v15 = vpop.f32.mrb[6].mxu0 }
 0x153   : > { %v7837_v26 = vadd.f32 %v5486_v15, %v5374_v12  ;;  %v1393_v16 = vpop.f32.mrb[7].mxu0 }
 0x154   : > { %v7839_v43 = vadd.f32 %v1393_v16, %v687_v18  ;;  %v7841_v42 = vpop.f32.mrb[20].mxu1 }
 0x155   : > { %v7843_v28 = vpop.f32.mrb[21].mxu1 }
 0x156   : > { %v5489_v52 = vpop.f32.mrb[8].mxu0 }
 0x157   : > { %v7845_v37 = vadd.f32 %v5489_v52, %v5405_v41  ;;  %v1405_v48 = vpop.f32.mrb[9].mxu0 }
 0x158   : > { %v7847_v60 = vadd.f32 %v1405_v48, %v873_v34  ;;  %v7849_v14 = vpop.f32.mrb[22].mxu1 }
 0x159   : > { %v7851_v63 = vpop.f32.mrb[23].mxu1 }
 0x15a   : > { %v5492_v10 = vpop.f32.mrb[10].mxu0 }
 0x15b   : > { %v7853_v12 = vadd.f32 %v5492_v10, %v5408_v21  ;;  %v1417_v15 = vpop.f32.mrb[11].mxu0 }
 0x15c   : > { %v7855_v18 = vadd.f32 %v1417_v15, %v887_v45  ;;  %v7857_v16 = vpop.f32.mrb[24].mxu1 }
 0x15d   : > { %v7859_v23 = vpop.f32.mrb[25].mxu1 }
 0x15e   : > { %v5495_v50 = vpop.f32.mrb[12].mxu0 }
 0x15f   : > { %v7861_v41 = vadd.f32 %v5495_v50, %v5411_v49  ;;  %v1429_v52 = vpop.f32.mrb[13].mxu0 }
 0x160   : > { %v7863_v34 = vadd.f32 %v1429_v52, %v901_v17  ;;  %v7865_v48 = vpop.f32.mrb[26].mxu1  ;;  %v7884_v17 = vld [vmem:[%s9186_s2] ss:$0 sm:$0xff] }
 0x161   : > { %v7867_v5 = vpop.f32.mrb[27].mxu1  ;;  %vm1606_vm1 = vcmp.gt.f32.partialorder %v5505_v8, %v7884_v17  ;;  %vm1605_vm3 = vcmp.gt.f32.partialorder %v1519_v3, %v7884_v17  ;;  %vm1608_vm7 = vcmp.gt.f32.partialorder %v5508_v44, %v7884_v17  ;;  %vm1607_vm9 = vcmp.gt.f32.partialorder %v1529_v61, %v7884_v17 }
 0x162   : > { %v5498_v38 = vpop.f32.mrb[14].mxu0  ;;  %vm1610_vm13 = vcmp.gt.f32.partialorder %v7841_v42, %v7884_v17  ;;  %vm1609_vm14 = vcmp.gt.f32.partialorder %v7843_v28, %v7884_v17 }
 0x163   : > { %v7869_v10 = vadd.f32 %v5498_v38, %v5414_v7  ;;  %v1441_v21 = vpop.f32.mrb[15].mxu0  ;;  %v7889_v38 = vld [vmem:[%s9186_s2 + $0x1] ss:$0 sm:$0xff] }
 0x164   : > { %v7871_v45 = vadd.f32 %v1441_v21, %v915_v4  ;;  %v7873_v15 = vpop.f32.mrb[28].mxu1 }
 0x165   : > { %v7875_v9 = vpop.f32.mrb[29].mxu1 }
 0x168   : > { %v7877_v30 = vpop.f32.mrb[30].mxu1 }
 0x169   : > { %v7879_v50 = vpop.f32.mrb[31].mxu1 }
 0x16c   : > { %v5533_v4 = vpop.f32.mrb[32].mxu1 }
 0x16d   : > { %vm1776_vm2 = vcmp.gt.f32.partialorder %v5533_v4, %v7889_v38  ;;  %v1689_v7 = vpop.f32.mrb[33].mxu1 }
 0x16e   : > { %vm1792_vm4 = vmand %vm1606_vm1, %vm1776_vm2  ;;  %vm1775_vm5 = vcmp.gt.f32.partialorder %v1689_v7, %v7889_v38  ;;  %vm1612_vm1 = vcmp.gt.f32.partialorder %v7849_v14, %v7884_v17 }
 0x16f   : > { %v1808_v49 = vsel %vm1792_vm4, %v6677_v57, 0.0  ;;  %vm1791_vm6 = vmand %vm1605_vm3, %vm1775_vm5  ;;  %vm1611_vm4 = vcmp.gt.f32.partialorder %v7851_v63, %v7884_v17 }
 0x170   : > { %v7895_v52 = vand.u32 4294901760, %v1808_v49  ;;  %v1807_v21 = vsel %vm1791_vm6, %v6678_v25, 0.0  ;;  %v5536_v29 = vpop.f32.mrb[34].mxu1  ;;  %vm1614_vm6 = vcmp.gt.f32.partialorder %v7857_v16, %v7884_v17 }
 0x171   : > { %v7898_v20 = vand.u32 4294901760, %v1807_v21  ;;  %vm1778_vm8 = vcmp.gt.f32.partialorder %v5536_v29, %v7889_v38  ;;  %v1699_v8 = vpop.f32.mrb[35].mxu1 }
 0x172   : > { %v7903_v3 = vsub.f32 %v1808_v49, %v7895_v52  ;;  %vm1794_vm10 = vmand %vm1608_vm7, %vm1778_vm8  ;;  %vm1777_vm11 = vcmp.gt.f32.partialorder %v1699_v8, %v7889_v38 }
 0x173   : > { %v7907_v57 = vsub.f32 %v1807_v21, %v7898_v20  ;;  %v1810_v25 = vsel %vm1794_vm10, %v7829_v36, 0.0  ;;  %vm1793_vm12 = vmand %vm1607_vm9, %vm1777_vm11  ;;  %vm1613_vm10 = vcmp.gt.f32.partialorder %v7859_v23, %v7884_v17 }
 0x174   : > { %v9239_v29 = vand.u32 4294901760, %v7903_v3  ;;  %v7913_v44 = vand.u32 4294901760, %v1810_v25  ;;  %v1809_v61 = vsel %vm1793_vm12, %v7831_v33, 0.0  ;;  %v5539_v4 = vpop.f32.mrb[36].mxu1 }
 0x175   : > { %v7918_v7 = vand.u32 4294901760, %v1809_v61  ;;  %vm1780_vm15 = vcmp.gt.f32.partialorder %v5539_v4, %v7889_v38  ;;  %v1709_v49 = vpop.f32.mrb[37].mxu1  ;;  %v9246_v36 = vand.u32 4294901760, %v7907_v57 }
 0x176   : > { %v1940_v42 = vsub.f32 %v7903_v3, %v9239_v29  ;;  %v7928_v33 = vsub.f32 %v1810_v25, %v7913_v44  ;;  %vm1796_vm2 = vmand %vm1610_vm13, %vm1780_vm15  ;;  %vm1779_vm3 = vcmp.gt.f32.partialorder %v1709_v49, %v7889_v38  ;;  %vm1616_vm15 = vcmp.gt.f32.partialorder %v7865_v48, %v7884_v17 }
 0x177   : > { %v7934_v28 = vsub.f32 %v1809_v61, %v7918_v7  ;;  %v1812_v21 = vsel %vm1796_vm2, %v7833_v47, 0.0  ;;  %vm1795_vm5 = vmand %vm1609_vm14, %vm1779_vm3  ;;  %v1930_v8 = vsub.f32 %v7907_v57, %v9246_v36  ;;  %vm1615_vm2 = vcmp.gt.f32.partialorder %v7867_v5, %v7884_v17 }
 0x178   : > { %v7942_v25 = vand.u32 4294901760, %v1812_v21  ;;  %v1811_v4 = vsel %vm1795_vm5, %v7835_v24, 0.0  ;;  %v5542_v49 = vpop.f32.mrb[38].mxu1  ;;  %v9247_v29 = vand.u32 4294901760, %v7928_v33  ;;  %v1941_v39 = vand.u32 4294901760, %v1940_v42 }
 0x179   : > { %v7946_v13 = vand.u32 4294901760, %v1811_v4  ;;  %vm1782_vm7 = vcmp.gt.f32.partialorder %v5542_v49, %v7889_v38  ;;  %v1719_v47 = vpop.f32.mrb[39].mxu1  ;;  %v1931_v61 = vand.u32 4294901760, %v1930_v8  ;;  %v9250_v62 = vand.u32 4294901760, %v7934_v28 }
 0x17a   : > { %v7951_v36 = vsub.f32 %v1812_v21, %v7942_v25  ;;  %vm1798_vm8 = vmand %vm1612_vm1, %vm1782_vm7  ;;  %vm1781_vm9 = vcmp.gt.f32.partialorder %v1719_v47, %v7889_v38  ;;  %v1960_v24 = vsub.f32 %v7928_v33, %v9247_v29 }
 0x17b   : > { %v7963_v8 = vsub.f32 %v1811_v4, %v7946_v13  ;;  %v1814_v42 = vsel %vm1798_vm8, %v7837_v26, 0.0  ;;  %vm1797_vm11 = vmand %vm1611_vm4, %vm1781_vm9  ;;  %5587 = vmatprep.mubr.f32.mxu1 %v1931_v61  ;;  %v1950_v14 = vsub.f32 %v7934_v28, %v9250_v62  ;;  %v3132_v62 = vld [vmem:[%s9185_s1 + $0x10] sm:$0xff]  ;;  %vm1617_vm8 = vcmp.gt.f32.partialorder %v7875_v9, %v7884_v17 }
 0x17c   : > { %v7972_v21 = vand.u32 4294901760, %v1814_v42  ;;  %v1813_v49 = vsel %vm1797_vm11, %v7839_v43, 0.0  ;;  %v5545_v47 = vpop.f32.mrb[40].mxu1  ;;  %5588 = vmatmul.mubr.f32.vlgmr.msra.gmra.mrb[48].mxu1 %v1941_v39  ;;  %v1961_v29 = vand.u32 4294901760, %v1960_v24  ;;  %v9251_v4 = vand.u32 4294901760, %v7951_v36  ;;  %v3133_v39 = vld [vmem:[%s9185_s1 + $0x28] sm:$0xff] }
 0x17d   : > { %v7976_v2 = vand.u32 4294901760, %v1813_v49  ;;  %vm1784_vm12 = vcmp.gt.f32.partialorder %v5545_v47, %v7889_v38  ;;  %6322 = vmatpush3.bf16.msra.mxu1 %v7686_v59  ;;  %v1729_v26 = vpop.f32.mrb[41].mxu1  ;;  %v1951_v63 = vand.u32 4294901760, %v1950_v14  ;;  %v9272_v61 = vand.u32 4294901760, %v7963_v8 }
 0x17e   : > { %v7988_v43 = vsub.f32 %v1814_v42, %v7972_v21  ;;  %vm1800_vm13 = vmand %vm1614_vm6, %vm1784_vm12  ;;  %vm1783_vm14 = vcmp.gt.f32.partialorder %v1729_v26, %v7889_v38  ;;  %6324 = vmatprep.subr.bf16.mxu1 %v7711_v11  ;;  %v1980_v59 = vsub.f32 %v7951_v36, %v9251_v4  ;;  %v6479_v24 = vpack.c.bf16 %v3133_v39, %v3132_v62 }
 0x17f   : > { %v8001_v14 = vsub.f32 %v1813_v49, %v7976_v2  ;;  %v1816_v42 = vsel %vm1800_vm13, %v7845_v37, 0.0  ;;  %vm1799_vm1 = vmand %vm1613_vm10, %vm1783_vm14  ;;  %5590 = vmatprep.mubr.f32.mxu1 %v1951_v63  ;;  %v1970_v16 = vsub.f32 %v7963_v8, %v9272_v61  ;;  %vm1618_vm6 = vcmp.gt.f32.partialorder %v7873_v15, %v7884_v17  ;;  %v9367_v61 = vld [vmem:[#allocation13_spill] sm:$0xff] }
 0x180   : > { %v8012_v62 = vand.u32 4294901760, %v1816_v42  ;;  %v1815_v47 = vsel %vm1799_vm1, %v7847_v60, 0.0  ;;  %v5548_v49 = vpop.f32.mrb[42].mxu1  ;;  %5591 = vmatmul.mubr.f32.gmra.mrb[50].mxu1 %v1961_v29  ;;  %v9252_v37 = vand.u32 4294901760, %v7988_v43  ;;  %6480 = vmatprep.subr.bf16.mxu0 %v6479_v24  ;;  %v1981_v60 = vand.u32 4294901760, %v1980_v59 }
 0x181   : > { %v8016_v26 = vand.u32 4294901760, %v1815_v47  ;;  %vm1786_vm3 = vcmp.gt.f32.partialorder %v5548_v49, %v7889_v38  ;;  %6326 = vmatpush3.bf16.msra.mxu1 %v7711_v11  ;;  %v1739_v23 = vpop.f32.mrb[43].mxu1  ;;  %v1971_v63 = vand.u32 4294901760, %v1970_v16  ;;  %v9271_v39 = vand.u32 4294901760, %v8001_v14  ;;  %6482 = vmatpush3.bf16.msra.mxu0 %v6479_v24 }
 0x182   : > { %v8022_v4 = vsub.f32 %v1816_v42, %v8012_v62  ;;  %vm1802_vm4 = vmand %vm1616_vm15, %vm1786_vm3  ;;  %vm1785_vm5 = vcmp.gt.f32.partialorder %v1739_v23, %v7889_v38  ;;  %6328 = vmatprep.subr.bf16.mxu1 %v7715_v27  ;;  %v2000_v11 = vsub.f32 %v7988_v43, %v9252_v37  ;;  %v6991_v37 = vld [vmem:[%s7175_s21 + $0x10] sm:$0xff]  ;;  %vm1620_vm12 = vcmp.gt.f32.partialorder %v7877_v30, %v7884_v17 }
 0x183   : > { %v8035_v29 = vsub.f32 %v1815_v47, %v8016_v26  ;;  %v1818_v24 = vsel %vm1802_vm4, %v7853_v12, 0.0  ;;  %vm1801_vm7 = vmand %vm1615_vm2, %vm1785_vm5  ;;  %5593 = vmatprep.mubr.f32.mxu1 %v1971_v63  ;;  %v1990_v48 = vsub.f32 %v8001_v14, %v9271_v39  ;;  %v6990_v47 = vld [vmem:[%s7175_s21 + $0x8] sm:$0xff]  ;;  %vm1619_vm14 = vcmp.gt.f32.partialorder %v7879_v50, %v7884_v17 }
 0x184   : > { %v8046_v59 = vand.u32 4294901760, %v1818_v24  ;;  %v1817_v42 = vsel %vm1801_vm7, %v7855_v18, 0.0  ;;  %v5551_v16 = vpop.f32.mrb[44].mxu1  ;;  %5594 = vmatmul.mubr.f32.gmra.mrb[52].mxu1 %v1981_v60  ;;  %v9253_v12 = vand.u32 4294901760, %v8022_v4  ;;  %5896 = vmatmul.mubr.msk.f32.vlgmr.msra.gmra.mrb[16].mxu0 %vm298_vm0, %v6990_v47 }
 0x185   : > { %v8052_v5 = vand.u32 4294901760, %v1817_v42  ;;  %vm1788_vm9 = vcmp.gt.f32.partialorder %v5551_v16, %v7889_v38  ;;  %6330 = vmatpush3.bf16.msra.mxu1 %v7715_v27  ;;  %v1749_v49 = vpop.f32.mrb[45].mxu1  ;;  %v1991_v23 = vand.u32 4294901760, %v1990_v48  ;;  %v9270_v63 = vand.u32 4294901760, %v8035_v29  ;;  %5898 = vmatprep.mubr.msk.f32.mxu0 %vm298_vm0, %v6991_v37  ;;  %v6992_v16 = vld [vmem:[%s7175_s21 + $0x18] sm:$0xff] }
 0x186   : > { %v8060_v18 = vsub.f32 %v1818_v24, %v8046_v59  ;;  %vm1804_vm10 = vmand %vm1618_vm6, %vm1788_vm9  ;;  %vm1787_vm11 = vcmp.gt.f32.partialorder %v1749_v49, %v7889_v38  ;;  %6332 = vmatprep.subr.bf16.mxu1 %v7731_v1  ;;  %v2001_v27 = vand.u32 4294901760, %v2000_v11  ;;  %v2020_v60 = vsub.f32 %v8022_v4, %v9253_v12  ;;  %v6993_v12 = vld [vmem:[%s7175_s21 + $0x20] sm:$0xff] }
 0x187   : > { %v8073_v37 = vsub.f32 %v1817_v42, %v8052_v5  ;;  %v1820_v24 = vsel %vm1804_vm10, %v7861_v41, 0.0  ;;  %vm1803_vm13 = vmand %vm1617_vm8, %vm1787_vm11  ;;  %5596 = vmatprep.mubr.f32.mxu1 %v1991_v23  ;;  %v2010_v15 = vsub.f32 %v8035_v29, %v9270_v63  ;;  %v9365_v63 = vld [vmem:[#allocation12_spill] sm:$0xff] }
 0x188   : > { %v8084_v11 = vand.u32 4294901760, %v1820_v24  ;;  %v1819_v48 = vsel %vm1803_vm13, %v7863_v34, 0.0  ;;  %v5554_v42 = vpop.f32.mrb[46].mxu1  ;;  %5597 = vmatmul.mubr.f32.gmra.mrb[54].mxu1 %v2001_v27  ;;  %v9268_v41 = vand.u32 4294901760, %v8060_v18  ;;  %5899 = vmatmul.mubr.msk.f32.gmra.mrb[18].mxu0 %vm298_vm0, %v6992_v16  ;;  %v9366_v39 = vand.u32 4294901760, %v9365_v63  ;;  %v9379_v63 = vld [vmem:[#allocation17_spill] sm:$0xff] }
 0x189   : > { %v8090_v9 = vand.u32 4294901760, %v1819_v48  ;;  %vm1790_vm15 = vcmp.gt.f32.partialorder %v5554_v42, %v7889_v38  ;;  %6334 = vmatpush3.bf16.msra.mxu1 %v7731_v1  ;;  %v1759_v47 = vpop.f32.mrb[47].mxu1  ;;  %v2011_v49 = vand.u32 4294901760, %v2010_v15  ;;  %v9269_v23 = vand.u32 4294901760, %v8073_v37  ;;  %5901 = vmatprep.mubr.msk.f32.mxu0 %vm298_vm0, %v6993_v12  ;;  %v6995_v42 = vld [vmem:[%s7175_s21 + $0x30] sm:$0xff] }
 0x18a   : > { %v8098_v34 = vsub.f32 %v1820_v24, %v8084_v11  ;;  %vm1806_vm1 = vmand %vm1620_vm12, %vm1790_vm15  ;;  %vm1789_vm2 = vcmp.gt.f32.partialorder %v1759_v47, %v7889_v38  ;;  %6336 = vmatprep.subr.bf16.mxu1 %v7763_v53  ;;  %v2021_v1 = vand.u32 4294901760, %v2020_v60  ;;  %v2040_v27 = vsub.f32 %v8060_v18, %v9268_v41 }
 0x18b   : > { %v8109_v12 = vsub.f32 %v1819_v48, %v8090_v9  ;;  %v1822_v24 = vsel %vm1806_vm1, %v7869_v10, 0.0  ;;  %vm1805_vm3 = vmand %vm1619_vm14, %vm1789_vm2  ;;  %5599 = vmatprep.mubr.f32.mxu1 %v2011_v49  ;;  %v2030_v30 = vsub.f32 %v8073_v37, %v9269_v23  ;;  %v6994_v48 = vld [vmem:[%s7175_s21 + $0x28] sm:$0xff]  ;;  %v9364_v23 = vand.u32 4294901760, %v7907_v57 }
 0x18c   : > { %v8118_v38 = vand.u32 4294901760, %v1822_v24  ;;  %v1821_v60 = vsel %vm1805_vm3, %v7871_v45, 0.0  ;;  %5600 = vmatmul.mubr.f32.gmra.mrb[56].mxu1 %v2021_v1  ;;  %v9266_v15 = vand.u32 4294901760, %v8098_v34  ;;  %5902 = vmatmul.mubr.msk.f32.gmra.mrb[20].mxu0 %vm298_vm0, %v6994_v48  ;;  %v2041_v16 = vand.u32 4294901760, %v2040_v27 }
 0x18d   : > { %v8124_v10 = vand.u32 4294901760, %v1821_v60  ;;  %6338 = vmatpush3.bf16.msra.mxu1 %v7763_v53  ;;  %v2031_v50 = vand.u32 4294901760, %v2030_v30  ;;  %v9267_v17 = vand.u32 4294901760, %v8109_v12  ;;  %5904 = vmatprep.mubr.msk.f32.mxu0 %vm298_vm0, %v6995_v42 }
 0x18e   : > { %v8131_v45 = vsub.f32 %v1822_v24, %v8118_v38  ;;  %6340 = vmatprep.subr.bf16.mxu1 %v7767_v22  ;;  %v2060_v47 = vsub.f32 %v8098_v34, %v9266_v15  ;;  %v6996_v24 = vld [vmem:[%s7175_s21 + $0x38] sm:$0xff]  ;;  %v9362_v15 = vld [vmem:[#allocation10_spill] sm:$0xff] }
 0x18f   : > { %v8138_v49 = vsub.f32 %v1821_v60, %v8124_v10  ;;  %5602 = vmatprep.mubr.f32.mxu1 %v2031_v50  ;;  %v2050_v53 = vsub.f32 %v8109_v12, %v9267_v17  ;;  %v6997_v60 = vld [vmem:[%s7175_s21 + $0x40] sm:$0xff]  ;;  %v9363_v17 = vand.u32 4294901760, %v9362_v15  ;;  %v9370_v15 = vand.u32 4294901760, %v7934_v28 }
 0x190   : > { %5603 = vmatmul.mubr.f32.gmra.mrb[58].mxu1 %v2041_v16  ;;  %v9264_v1 = vand.u32 4294901760, %v8131_v45  ;;  %5905 = vmatmul.mubr.msk.f32.gmra.mrb[22].mxu0 %vm298_vm0, %v6996_v24  ;;  %v2061_v48 = vand.u32 4294901760, %v2060_v47  ;;  %v7000_v24 = vld [vmem:[%s7175_s21 + $0x58] sm:$0xff] }
 0x191   : > { %6342 = vmatpush3.bf16.msra.mxu1 %v7767_v22  ;;  %v2051_v27 = vand.u32 4294901760, %v2050_v53  ;;  %v9265_v30 = vand.u32 4294901760, %v8138_v49  ;;  %5907 = vmatprep.mubr.msk.f32.mxu0 %vm298_vm0, %v6997_v60  ;;  %v6998_v22 = vld [vmem:[%s7175_s21 + $0x48] sm:$0xff]  ;;  %v6999_v53 = vld [vmem:[%s7175_s21 + $0x50] sm:$0xff] }
 0x192   : > { %6344 = vmatprep.subr.bf16.mxu1 %v7787_v46  ;;  %v2080_v50 = vsub.f32 %v8131_v45, %v9264_v1  ;;  %v7003_v60 = vld [vmem:[%s7175_s21 + $0x70] sm:$0xff]  ;;  %v9360_v1 = vld [vmem:[#allocation9_spill] sm:$0xff] }
 0x193   : > { %5605 = vmatprep.mubr.f32.mxu1 %v2051_v27  ;;  %v2070_v42 = vsub.f32 %v8138_v49, %v9265_v30  ;;  %v7002_v27 = vld [vmem:[%s7175_s21 + $0x68] sm:$0xff]  ;;  %v9361_v30 = vand.u32 4294901760, %v9360_v1 }
 0x194   : > { %5606 = vmatmul.mubr.f32.gmra.mrb[60].mxu1 %v2061_v48  ;;  %5908 = vmatmul.mubr.msk.f32.gmra.mrb[24].mxu0 %vm298_vm0, %v6998_v22  ;;  %v2081_v47 = vand.u32 4294901760, %v2080_v50  ;;  %v8233_v48 = vld [vmem:[%s9190_s6 + $0x20] sm:$0xff] }
 0x195   : > { %6346 = vmatpush3.bf16.msra.mxu1 %v7787_v46  ;;  %v2071_v16 = vand.u32 4294901760, %v2070_v42  ;;  %5910 = vmatprep.mubr.msk.f32.mxu0 %vm298_vm0, %v6999_v53  ;;  %v7001_v46 = vld [vmem:[%s7175_s21 + $0x60] sm:$0xff]  ;;  %v6415_v41 = vpack.c.bf16 %v9363_v17, %v9361_v30  ;;  %v9371_v17 = vld [vmem:[#allocation14_spill] sm:$0xff]  ;;  %v9373_v30 = vld [vmem:[#allocation15_spill] sm:$0xff] }
 0x196   : > { %6348 = vmatprep.subr.bf16.mxu1 %v7795_v40  ;;  %v9372_v1 = vand.u32 4294901760, %v9371_v17  ;;  %v9387_v17 = vand.u32 4294901760, %v7988_v43 }
 0x197   : > { %5608 = vmatprep.mubr.f32.mxu1 %v2071_v16  ;;  %v9256_v16 = vand.u32 4294901760, %v8233_v48 }
 0x198   : > { %5609 = vmatmul.mubr.f32.gmra.mrb[62].mxu1 %v2081_v47  ;;  %5911 = vmatmul.mubr.msk.f32.gmra.mrb[26].mxu0 %vm298_vm0, %v7000_v24  ;;  %v8262_v47 = vld [vmem:[%s9190_s6 + $0x30] sm:$0xff]  ;;  %v8267_v24 = vld [vmem:[%s9190_s6 + $0x38] sm:$0xff] }
 0x199   : > { %6350 = vmatpush3.bf16.msra.mxu1 %v7795_v40  ;;  %5643 = vmatprep.mubr.f32.mxu1 %v7898_v20  ;;  %v7004_v40 = vld [vmem:[%s7175_s21 + $0x78] sm:$0xff]  ;;  %s4657_s21 = sshll.u32 %s9114_s15, 4  ;;  %s9137_s21 = int_to_ptr.vmem [resolvable:$true] %s4657_s21 }
 0x19a   : > { %6352 = vmatprep.subr.bf16.mxu1 %v7799_v32  ;;  %5913 = vmatprep.mubr.msk.f32.mxu0 %vm298_vm0, %v7001_v46  ;;  %s7005_s20 = scalar_lea.vmem %s9137_s21, 2048  ;;  %p7012_p0 = scmp.lt.s32.totalorder %s9137_s21, %s7010_s23 }
 0x19b   : > { %p7006_p11 = scmp.ne.s32.totalorder %s9137_s21, %s7005_s20  ;;  %p7013_p1 = scmp.lt.s32.totalorder %s7011_s29, %s7005_s20 }
 0x19c   : > { %5644 = vmatmul.mubr.f32.vlgmr.msra.gmra.mrb[48].mxu1 %v7895_v52  ;;  %5914 = vmatmul.mubr.msk.f32.gmra.mrb[28].mxu0 %vm298_vm0, %v7002_v27  ;;  %v9260_v27 = vand.u32 4294901760, %v8262_v47 }
 0x19d   : > { %6354 = vmatpush3.bf16.msra.mxu1 %v7799_v32  ;;  %5646 = vmatprep.mubr.f32.mxu1 %v7918_v7  ;;  %v8208_v32 = vld [vmem:[%s9190_s6] sm:$0xff]  ;;  %p7007_p12 = pnand %p7006_p11, %p7150_p5  ;;  %p7014_p2 = por %p7013_p1, %p7012_p0 }
 0x19e   : > { %6356 = vmatprep.subr.bf16.mxu1 %v7803_v58  ;;  %5916 = vmatprep.mubr.msk.f32.mxu0 %vm298_vm0, %v7003_v60  ;;  %v9259_v60 = vand.u32 4294901760, %v8267_v24 }
 0x19f   : > { %p7008_p13 = pneg %p7007_p12 }
 0x1a0   : > { %5647 = vmatmul.mubr.f32.gmra.mrb[50].mxu1 %v7913_v44  ;;  %5917 = vmatmul.mubr.msk.f32.gmra.mrb[30].mxu0 %vm298_vm0, %v7004_v40  ;;  %v8287_v40 = vld [vmem:[%s9190_s6 + $0x40] sm:$0xff] }
 0x1a1   : > { %6358 = vmatpush3.bf16.msra.mxu1 %v7803_v58  ;;  %5649 = vmatprep.mubr.f32.mxu1 %v7946_v13  ;;  %v8213_v58 = vld [vmem:[%s9190_s6 + $0x8] sm:$0xff]  ;;  %p7015_p3 = pnand %p7014_p2, %p7008_p13 }
 0x1a2   : > { %6360 = vmatprep.subr.bf16.mxu1 %v7807_v54 }
 0x1a4   : > { %5650 = vmatmul.mubr.f32.gmra.mrb[52].mxu1 %v7942_v25 }
 0x1a5   : > { %6362 = vmatpush3.bf16.msra.mxu1 %v7807_v54  ;;  %5652 = vmatprep.mubr.f32.mxu1 %v7976_v2  ;;  %v8218_v54 = vld [vmem:[%s9190_s6 + $0x10] sm:$0xff] }
 0x1a6   : > { %6364 = vmatprep.subr.bf16.mxu1 %v7811_v6 }
 0x1a8   : > { %5653 = vmatmul.mubr.f32.gmra.mrb[54].mxu1 %v7972_v21 }
 0x1a9   : > { %6366 = vmatpush3.bf16.msra.mxu1 %v7811_v6  ;;  %5655 = vmatprep.mubr.f32.mxu1 %v8016_v26  ;;  %v9261_v6 = vand.u32 4294901760, %v8208_v32 }
 0x1aa   : > { %6368 = vmatprep.subr.bf16.mxu1 %v7815_v56 }
 0x1ac   : > { %5656 = vmatmul.mubr.f32.gmra.mrb[56].mxu1 %v8012_v62 }
 0x1ad   : > { %6370 = vmatpush3.bf16.msra.mxu1 %v7815_v56  ;;  %5658 = vmatprep.mubr.f32.mxu1 %v8052_v5  ;;  %v9258_v56 = vand.u32 4294901760, %v8213_v58 }
 0x1ae   : > { %6372 = vmatprep.subr.bf16.mxu1 %v7819_v31 }
 0x1af   : > { %v8246_v42 = vpack.c.bf16 %v9258_v56, %v9261_v6  ;;  %v9354_v56 = vld [vmem:[#allocation5_spill] sm:$0xff]  ;;  %v9357_v6 = vld [vmem:[#allocation7_spill] sm:$0xff] }
 0x1b0   : > { %5659 = vmatmul.mubr.f32.gmra.mrb[58].mxu1 %v8046_v59 }
 0x1b1   : > { %6374 = vmatpush3.bf16.msra.mxu1 %v7819_v31  ;;  %5661 = vmatprep.mubr.f32.mxu1 %v8090_v9  ;;  %v8227_v31 = vld [vmem:[%s9190_s6 + $0x18] sm:$0xff] }
 0x1b2   : > { %6376 = vmatprep.subr.bf16.mxu1 %v7823_v0  ;;  %v9254_v50 = vand.u32 4294901760, %v8227_v31  ;;  %6484 = vmatprep.subr.bf16.mxu0 %v8246_v42 }
 0x1b3   : > { %6486 = vmatpush3.bf16.msra.mxu0 %v8246_v42 }
 0x1b4   : > { %5662 = vmatmul.mubr.f32.gmra.mrb[60].mxu1 %v8084_v11 }
 0x1b5   : > { %6378 = vmatpush3.bf16.msra.mxu1 %v7823_v0  ;;  %5664 = vmatprep.mubr.f32.mxu1 %v8124_v10  ;;  %v9257_v0 = vand.u32 4294901760, %v8218_v54 }
 0x1b6   : > { %6380 = vmatprep.subr.bf16.mxu1 %v7827_v55 }
 0x1b7   : > { %v8253_v22 = vpack.c.bf16 %v9254_v50, %v9257_v0  ;;  %v8292_v50 = vld [vmem:[%s9190_s6 + $0x48] sm:$0xff] }
 0x1b8   : > { %5665 = vmatmul.mubr.f32.gmra.mrb[62].mxu1 %v8118_v38  ;;  %v9262_v0 = vand.u32 4294901760, %v8292_v50 }
 0x1b9   : > { %6382 = vmatpush3.bf16.msra.mxu1 %v7827_v55  ;;  %5699 = vmatprep.mubr.f32.mxu1 %v7907_v57  ;;  %v8238_v55 = vld [vmem:[%s9190_s6 + $0x28] sm:$0xff]  ;;  %9351 = vst [vmem:[#allocation26_spill] sm:$0xff] %v8253_v22 }
 0x1ba   : > { %6384 = vmatprep.subr.bf16.mxu1 %v7562_v19  ;;  %v9255_v53 = vand.u32 4294901760, %v8238_v55  ;;  %6488 = vmatprep.subr.bf16.mxu0 %v8253_v22 }
 0x1bb   : > { %6490 = vmatpush3.bf16.msra.mxu0 %v8253_v22  ;;  %v9374_v22 = vand.u32 4294901760, %v9373_v30 }
 0x1bc   : > { %5700 = vmatmul.mubr.f32.vlgmr.msra.gmra.mrb[48].mxu1 %v7903_v3  ;;  %v8278_v46 = vpack.c.bf16 %v9255_v53, %v9256_v16  ;;  %v8302_v53 = vpack.c.bf16 %v9259_v60, %v9260_v27  ;;  %v9263_v16 = vand.u32 4294901760, %v8287_v40  ;;  %v9356_v27 = vld [vmem:[#allocation6_spill] sm:$0xff] }
 0x1bd   : > { %6386 = vmatpush3.bf16.msra.mxu1 %v7562_v19  ;;  %5702 = vmatprep.mubr.f32.mxu1 %v7934_v28  ;;  %v6423_v57 = vpack.c.bf16 %v9374_v22, %v9372_v1  ;;  %v9388_v1 = vand.u32 4294901760, %v8035_v29 }
 0x1be   : > { %6388 = vmatprep.subr.bf16.mxu1 %v7572_v35  ;;  %9352 = vst [vmem:[#allocation27_spill] sm:$0xff] %v8278_v46  ;;  %6492 = vmatprep.subr.bf16.mxu0 %v8278_v46  ;;  %9353 = vst [vmem:[#allocation28_spill] sm:$0xff] %v8302_v53  ;;  %v8316_v60 = vpack.c.bf16 %v9262_v0, %v9263_v16  ;;  %v9358_v0 = vld [vmem:[#allocation8_spill] sm:$0xff]  ;;  %v9359_v16 = vld [vmem:[#allocation11_spill] sm:$0xff] }
 0x1bf   : > { %6494 = vmatpush3.bf16.msra.mxu0 %v8278_v46  ;;  %v9369_v46 = vand.u32 4294901760, %v7903_v3  ;;  %v9377_v3 = vld [vmem:[#allocation16_spill] sm:$0xff] }
 0x1c0   : > { %5703 = vmatmul.mubr.f32.gmra.mrb[50].mxu1 %v7928_v33  ;;  %6496 = vmatprep.subr.bf16.mxu0 %v8302_v53  ;;  %9355 = vst [vmem:[#allocation5_spill] sm:$0xff] %v8316_v60 }
 0x1c1   : > { %6390 = vmatpush3.bf16.msra.mxu1 %v7572_v35  ;;  %5705 = vmatprep.mubr.f32.mxu1 %v7963_v8 }
 0x1c2   : > { %6392 = vmatprep.subr.bf16.mxu1 %v7582_v51 }
 0x1c3   : > { %6498 = vmatpush3.bf16.msra.mxu0 %v8302_v53 }
 0x1c4   : > { %5706 = vmatmul.mubr.f32.gmra.mrb[52].mxu1 %v7951_v36  ;;  %6500 = vmatprep.subr.bf16.mxu0 %v8316_v60 }
 0x1c5   : > { %6394 = vmatpush3.bf16.msra.mxu1 %v7582_v51  ;;  %5708 = vmatprep.mubr.f32.mxu1 %v8001_v14 }
 0x1c6   : > { %6396 = vmatprep.subr.bf16.mxu1 %v9354_v56 }
 0x1c7   : > { %6502 = vmatpush3.bf16.msra.mxu0 %v8316_v60  ;;  %v9368_v60 = vand.u32 4294901760, %v9367_v61  ;;  %v9376_v61 = vand.u32 4294901760, %v7963_v8 }
 0x1c8   : > { %5709 = vmatmul.mubr.f32.gmra.mrb[54].mxu1 %v7988_v43  ;;  %v9395_v43 = vld [vmem:[#allocation22_spill] sm:$0xff] }
 0x1c9   : > { %6398 = vmatpush3.bf16.msra.mxu1 %v9354_v56  ;;  %5711 = vmatprep.mubr.f32.mxu1 %v8035_v29  ;;  %v6419_v53 = vpack.c.bf16 %v9368_v60, %v9366_v39  ;;  %v9378_v39 = vand.u32 4294901760, %v9377_v3  ;;  %v9382_v60 = vand.u32 4294901760, %v8001_v14  ;;  %v9394_v3 = vand.u32 4294901760, %v8073_v37 }
 0x1ca   : > { %6400 = vmatprep.subr.bf16.mxu1 %v9356_v27 }
 0x1cc   : > { %5712 = vmatmul.mubr.f32.gmra.mrb[56].mxu1 %v8022_v4 }
 0x1cd   : > { %6402 = vmatpush3.bf16.msra.mxu1 %v9356_v27  ;;  %5714 = vmatprep.mubr.f32.mxu1 %v8073_v37 }
 0x1ce   : > { %6404 = vmatprep.subr.bf16.mxu1 %v9357_v6 }
 0x1d0   : > { %5715 = vmatmul.mubr.f32.gmra.mrb[58].mxu1 %v8060_v18 }
 0x1d1   : > { %6406 = vmatpush3.bf16.msra.mxu1 %v9357_v6  ;;  %5717 = vmatprep.mubr.f32.mxu1 %v8109_v12 }
 0x1d2   : > { %6408 = vmatprep.subr.bf16.mxu1 %v9358_v0 }
 0x1d4   : > { %5718 = vmatmul.mubr.f32.gmra.mrb[60].mxu1 %v8098_v34 }
 0x1d5   : > { %6410 = vmatpush3.bf16.msra.mxu1 %v9358_v0  ;;  %5720 = vmatprep.mubr.f32.mxu1 %v8138_v49 }
 0x1d6   : > { %6412 = vmatprep.subr.bf16.mxu1 %v9359_v16 }
 0x1d8   : > { %5721 = vmatmul.mubr.f32.gmra.mrb[62].mxu1 %v8131_v45 }
 0x1d9   : > { %6414 = vmatpush3.bf16.msra.mxu1 %v9359_v16  ;;  %5755 = vmatprep.mubr.f32.mxu1 %v9364_v23  ;;  %v9375_v23 = vand.u32 4294901760, %v7928_v33  ;;  %v9383_v33 = vld [vmem:[#allocation18_spill] sm:$0xff] }
 0x1da   : > { %6416 = vmatprep.subr.bf16.mxu1 %v6415_v41  ;;  %v9384_v22 = vand.u32 4294901760, %v9383_v33  ;;  %v9403_v33 = vld [vmem:[#allocation25_spill] sm:$0xff] }
 0x1dc   : > { %5756 = vmatmul.mubr.f32.vlgmr.msra.gmra.mrb[48].mxu1 %v9369_v46  ;;  %v9381_v46 = vand.u32 4294901760, %v7951_v36  ;;  %v9389_v36 = vld [vmem:[#allocation20_spill] sm:$0xff] }
 0x1dd   : > { %6418 = vmatpush3.bf16.msra.mxu1 %v6415_v41  ;;  %5758 = vmatprep.mubr.f32.mxu1 %v9370_v15  ;;  %v9380_v41 = vand.u32 4294901760, %v9379_v63  ;;  %v9390_v30 = vand.u32 4294901760, %v9389_v36  ;;  %v9397_v63 = vld [vmem:[#allocation23_spill] sm:$0xff] }
 0x1de   : > { %6420 = vmatprep.subr.bf16.mxu1 %v6419_v53 }
 0x1df   : > { %v6427_v28 = vpack.c.bf16 %v9380_v41, %v9378_v39  ;;  %v9396_v39 = vand.u32 4294901760, %v9395_v43  ;;  %v9398_v41 = vand.u32 4294901760, %v9397_v63 }
 0x1e0   : > { %5759 = vmatmul.mubr.f32.gmra.mrb[50].mxu1 %v9375_v23 }
 0x1e1   : > { %6422 = vmatpush3.bf16.msra.mxu1 %v6419_v53  ;;  %5761 = vmatprep.mubr.f32.mxu1 %v9376_v61  ;;  %v9385_v53 = vld [vmem:[#allocation19_spill] sm:$0xff]  ;;  %v9393_v61 = vand.u32 4294901760, %v8022_v4  ;;  %v6439_v29 = vpack.c.bf16 %v9398_v41, %v9396_v39  ;;  %v9401_v4 = vld [vmem:[#allocation24_spill] sm:$0xff] }
 0x1e2   : > { %6424 = vmatprep.subr.bf16.mxu1 %v6423_v57  ;;  %v9386_v15 = vand.u32 4294901760, %v9385_v53  ;;  %v9405_v53 = vand.u32 4294901760, %v8098_v34  ;;  %v3333_v34 = vld [vmem:[%s9190_s6 + $0x78] sm:$0xff] }
 0x1e4   : > { %5762 = vmatmul.mubr.f32.gmra.mrb[52].mxu1 %v9381_v46  ;;  %v6431_v8 = vpack.c.bf16 %v9386_v15, %v9384_v22  ;;  %v9400_v46 = vand.u32 4294901760, %v8109_v12  ;;  %v9404_v22 = vand.u32 4294901760, %v9403_v33  ;;  %v9406_v15 = vand.u32 4294901760, %v8138_v49 }
 0x1e5   : > { %6426 = vmatpush3.bf16.msra.mxu1 %v6423_v57  ;;  %5764 = vmatprep.mubr.f32.mxu1 %v9382_v60  ;;  %v9391_v57 = vld [vmem:[#allocation21_spill] sm:$0xff]  ;;  %v9402_v60 = vand.u32 4294901760, %v9401_v4  ;;  %v9411_v12 = vand.u32 4294901760, %v8213_v58  ;;  %v3387_v49 = vand.u32 4294901760, %v3333_v34 }
 0x1e6   : > { %6428 = vmatprep.subr.bf16.mxu1 %v6427_v28  ;;  %v9392_v23 = vand.u32 4294901760, %v9391_v57 }
 0x1e7   : > { %v6443_v37 = vpack.c.bf16 %v9404_v22, %v9402_v60 }
 0x1e8   : > { %5765 = vmatmul.mubr.f32.gmra.mrb[54].mxu1 %v9387_v17  ;;  %v6435_v14 = vpack.c.bf16 %v9392_v23, %v9390_v30 }
 0x1e9   : > { %6430 = vmatpush3.bf16.msra.mxu1 %v6427_v28  ;;  %5767 = vmatprep.mubr.f32.mxu1 %v9388_v1  ;;  %v9399_v28 = vand.u32 4294901760, %v8060_v18  ;;  %v9407_v18 = vand.u32 4294901760, %v8131_v45 }
 0x1ea   : > { %6432 = vmatprep.subr.bf16.mxu1 %v6431_v8 }
 0x1ec   : > { %5768 = vmatmul.mubr.f32.gmra.mrb[56].mxu1 %v9393_v61 }
 0x1ed   : > { %6434 = vmatpush3.bf16.msra.mxu1 %v6431_v8  ;;  %5770 = vmatprep.mubr.f32.mxu1 %v9394_v3 }
 0x1ee   : > { %6436 = vmatprep.subr.bf16.mxu1 %v6435_v14 }
 0x1f0   : > { %5771 = vmatmul.mubr.f32.gmra.mrb[58].mxu1 %v9399_v28 }
 0x1f1   : > { %6438 = vmatpush3.bf16.msra.mxu1 %v6435_v14  ;;  %5773 = vmatprep.mubr.f32.mxu1 %v9400_v46 }
 0x1f2   : > { %6440 = vmatprep.subr.bf16.mxu1 %v6439_v29 }
 0x1f4   : > { %5774 = vmatmul.mubr.f32.gmra.mrb[60].mxu1 %v9405_v53 }
 0x1f5   : > { %6442 = vmatpush3.bf16.msra.mxu1 %v6439_v29  ;;  %5776 = vmatprep.mubr.f32.mxu1 %v9406_v15 }
 0x1f6   : > { %6444 = vmatprep.subr.bf16.mxu1 %v6443_v37 }
 0x1f8   : > { %5777 = vmatmul.mubr.f32.gmra.mrb[62].mxu1 %v9407_v18 }
 0x1f9   : > { %6446 = vmatpush3.bf16.msra.mxu1 %v6443_v37  ;;  %5811 = vmatprep.mubr.f32.mxu1 %v7898_v20 }
 0x1fa   : > { %6448 = vmatprep.subr.bf16.mxu1 %v7562_v19 }
 0x1fc   : > { %5812 = vmatmul.mubr.f32.vlgmr.msra.gmra.mrb[48].mxu1 %v7895_v52 }
 0x1fd   : > { %6450 = vmatpush3.bf16.msra.mxu1 %v7562_v19  ;;  %5814 = vmatprep.mubr.f32.mxu1 %v7918_v7  ;;  %v3328_v19 = vld [vmem:[%s9190_s6 + $0x50] sm:$0xff] }
 0x1fe   : > { %6452 = vmatprep.subr.bf16.mxu1 %v7572_v35 }
 0x200   : > { %5815 = vmatmul.mubr.f32.gmra.mrb[50].mxu1 %v7913_v44 }
 0x201   : > { %6454 = vmatpush3.bf16.msra.mxu1 %v7572_v35  ;;  %5817 = vmatprep.mubr.f32.mxu1 %v7946_v13  ;;  %v3329_v35 = vld [vmem:[%s9190_s6 + $0x58] sm:$0xff] }
 0x202   : > { %6456 = vmatprep.subr.bf16.mxu1 %v7582_v51 }
 0x204   : > { %5818 = vmatmul.mubr.f32.gmra.mrb[52].mxu1 %v7942_v25 }
 0x205   : > { %6458 = vmatpush3.bf16.msra.mxu1 %v7582_v51  ;;  %5820 = vmatprep.mubr.f32.mxu1 %v7976_v2 }
 0x206   : > { %6460 = vmatprep.subr.bf16.mxu1 %v9354_v56 }
 0x208   : > { %5821 = vmatmul.mubr.f32.gmra.mrb[54].mxu1 %v7972_v21 }
 0x209   : > { %6462 = vmatpush3.bf16.msra.mxu1 %v9354_v56  ;;  %5823 = vmatprep.mubr.f32.mxu1 %v8016_v26 }
 0x20a   : > { %6464 = vmatprep.subr.bf16.mxu1 %v9356_v27 }
 0x20c   : > { %5824 = vmatmul.mubr.f32.gmra.mrb[56].mxu1 %v8012_v62 }
 0x20d   : > { %6466 = vmatpush3.bf16.msra.mxu1 %v9356_v27  ;;  %5826 = vmatprep.mubr.f32.mxu1 %v8052_v5 }
 0x20e   : > { %6468 = vmatprep.subr.bf16.mxu1 %v9357_v6 }
 0x210   : > { %5827 = vmatmul.mubr.f32.gmra.mrb[58].mxu1 %v8046_v59 }
 0x211   : > { %6470 = vmatpush3.bf16.msra.mxu1 %v9357_v6  ;;  %5829 = vmatprep.mubr.f32.mxu1 %v8090_v9 }
 0x212   : > { %6472 = vmatprep.subr.bf16.mxu1 %v9358_v0 }
 0x214   : > { %5830 = vmatmul.mubr.f32.gmra.mrb[60].mxu1 %v8084_v11 }
 0x215   : > { %6474 = vmatpush3.bf16.msra.mxu1 %v9358_v0  ;;  %5832 = vmatprep.mubr.f32.mxu1 %v8124_v10 }
 0x216   : > { %6476 = vmatprep.subr.bf16.mxu1 %v9359_v16 }
 0x218   : > { %5833 = vmatmul.mubr.f32.gmra.mrb[62].mxu1 %v8118_v38 }
 0x219   : > { %6478 = vmatpush3.bf16.msra.mxu1 %v9359_v16  ;;  %5867 = vmatprep.mubr.f32.mxu1 %v7898_v20 }
 0x21c   : > { %5868 = vmatmul.mubr.f32.vlgmr.msra.gmra.mrb[48].mxu1 %v7895_v52 }
 0x21d   : > { %5870 = vmatprep.mubr.f32.mxu1 %v7918_v7  ;;  %v3331_v7 = vld [vmem:[%s9190_s6 + $0x68] sm:$0xff] }
 0x220   : > { %5871 = vmatmul.mubr.f32.gmra.mrb[50].mxu1 %v7913_v44  ;;  %v3330_v44 = vld [vmem:[%s9190_s6 + $0x60] sm:$0xff] }
 0x221   : > { %5873 = vmatprep.mubr.f32.mxu1 %v7946_v13  ;;  %v3375_v13 = vand.u32 4294901760, %v3329_v35 }
 0x223   : > { %v8531_v39 = vsub.f32 %v3329_v35, %v3375_v13  ;;  %v8556_v35 = vsub.f32 %v3333_v34, %v3387_v49 }
 0x224   : > { %5874 = vmatmul.mubr.f32.gmra.mrb[52].mxu1 %v7942_v25 }
 0x225   : > { %5876 = vmatprep.mubr.f32.mxu1 %v7976_v2  ;;  %v3372_v2 = vand.u32 4294901760, %v3328_v19  ;;  %9415 = vst [vmem:[#allocation10_spill] sm:$0xff] %v8531_v39  ;;  %v9285_v28 = vand.u32 4294901760, %v8531_v39  ;;  %9419 = vst [vmem:[#allocation15_spill] sm:$0xff] %v8556_v35 }
 0x227   : > { %v8460_v52 = vpack.c.bf16 %v3375_v13, %v3372_v2  ;;  %v8529_v43 = vsub.f32 %v3328_v19, %v3372_v2  ;;  %v3663_v60 = vsub.f32 %v8531_v39, %v9285_v28 }
 0x228   : > { %5877 = vmatmul.mubr.f32.gmra.mrb[54].mxu1 %v7972_v21  ;;  %v3378_v21 = vand.u32 4294901760, %v3330_v44 }
 0x229   : > { %5879 = vmatprep.mubr.f32.mxu1 %v8016_v26  ;;  %6504 = vmatprep.subr.bf16.mxu0 %v8460_v52  ;;  %9414 = vst [vmem:[#allocation9_spill] sm:$0xff] %v8529_v43  ;;  %v9286_v41 = vand.u32 4294901760, %v8529_v43  ;;  %v3664_v53 = vand.u32 4294901760, %v3663_v60 }
 0x22a   : > { %6506 = vmatpush3.bf16.msra.mxu0 %v8460_v52  ;;  %v8542_v4 = vsub.f32 %v3330_v44, %v3378_v21 }
 0x22b   : > { %v3656_v46 = vsub.f32 %v8529_v43, %v9286_v41 }
 0x22c   : > { %5880 = vmatmul.mubr.f32.gmra.mrb[56].mxu1 %v8012_v62  ;;  %v3381_v62 = vand.u32 4294901760, %v3331_v7  ;;  %9416 = vst [vmem:[#allocation12_spill] sm:$0xff] %v8542_v4  ;;  %v9284_v37 = vand.u32 4294901760, %v8542_v4 }
 0x22d   : > { %5882 = vmatprep.mubr.f32.mxu1 %v8052_v5  ;;  %v9409_v5 = vand.u32 4294901760, %v8208_v32  ;;  %v3657_v22 = vand.u32 4294901760, %v3656_v46  ;;  %v9420_v46 = vand.u32 4294901760, %v8218_v54 }
 0x22e   : > { %v8547_v33 = vsub.f32 %v3331_v7, %v3381_v62  ;;  %v3670_v18 = vsub.f32 %v8542_v4, %v9284_v37 }
 0x22f   : > { %v8558_v2 = vpack.c.bf16 %v3664_v53, %v3657_v22  ;;  %v8594_v60 = vsub.f32 %v8218_v54, %v9420_v46  ;;  %v9421_v22 = vand.u32 4294901760, %v8227_v31 }
 0x230   : > { %5883 = vmatmul.mubr.f32.gmra.mrb[58].mxu1 %v8046_v59  ;;  %v8474_v59 = vpack.c.bf16 %v3381_v62, %v3378_v21  ;;  %9417 = vst [vmem:[#allocation13_spill] sm:$0xff] %v8547_v33  ;;  %v9283_v15 = vand.u32 4294901760, %v8547_v33  ;;  %v3671_v44 = vand.u32 4294901760, %v3670_v18  ;;  %v9281_v21 = vand.u32 4294901760, %v8556_v35 }
 0x231   : > { %5885 = vmatprep.mubr.f32.mxu1 %v8090_v9  ;;  %v3332_v9 = vld [vmem:[%s9190_s6 + $0x70] sm:$0xff]  ;;  %v8599_v53 = vsub.f32 %v8227_v31, %v9421_v22  ;;  %v9422_v18 = vand.u32 4294901760, %v8233_v48  ;;  %v8618_v31 = vld [vmem:[%s9186_s2 + $0x2] ss:$0 sm:$0xff] }
 0x232   : > { %9408 = vst [vmem:[#allocation6_spill] sm:$0xff] %v8474_v59  ;;  %6508 = vmatprep.subr.bf16.mxu0 %v8474_v59  ;;  %v3384_v45 = vand.u32 4294901760, %v3332_v9  ;;  %v3677_v13 = vsub.f32 %v8547_v33, %v9283_v15 }
 0x233   : > { %6510 = vmatpush3.bf16.msra.mxu0 %v8474_v59  ;;  %v9289_v54 = vand.u32 4294901760, %v8599_v53 }
 0x234   : > { %5886 = vmatmul.mubr.f32.gmra.mrb[60].mxu1 %v8084_v11  ;;  %v8479_v11 = vsub.f32 %v8208_v32, %v9409_v5  ;;  %v8500_v0 = vpack.c.bf16 %v3387_v49, %v3384_v45  ;;  %v8554_v19 = vsub.f32 %v3332_v9, %v3384_v45  ;;  %v3678_v62 = vand.u32 4294901760, %v3677_v13 }
 0x235   : > { %5888 = vmatprep.mubr.f32.mxu1 %v8124_v10  ;;  %v3691_v9 = vsub.f32 %v8556_v35, %v9281_v21  ;;  %v8604_v13 = vsub.f32 %v8233_v48, %v9422_v18  ;;  %v9424_v48 = vand.u32 4294901760, %v8262_v47  ;;  %v3607_v22 = vsub.f32 %v8599_v53, %v9289_v54 }
 0x236   : > { %9410 = vst [vmem:[#allocation7_spill] sm:$0xff] %v8479_v11  ;;  %v9292_v32 = vand.u32 4294901760, %v8479_v11  ;;  %9413 = vst [vmem:[#allocation11_spill] sm:$0xff] %v8500_v0  ;;  %6512 = vmatprep.subr.bf16.mxu0 %v8500_v0  ;;  %v9282_v7 = vand.u32 4294901760, %v8554_v19  ;;  %v8571_v34 = vpack.c.bf16 %v3678_v62, %v3671_v44  ;;  %v9423_v44 = vand.u32 4294901760, %v8238_v55 }
 0x237   : > { %6514 = vmatpush3.bf16.msra.mxu0 %v8500_v0  ;;  %9418 = vst [vmem:[#allocation14_spill] sm:$0xff] %v8554_v19  ;;  %v3692_v45 = vand.u32 4294901760, %v3691_v9  ;;  %v9288_v9 = vand.u32 4294901760, %v8604_v13  ;;  %v9425_v18 = vand.u32 4294901760, %v8267_v24  ;;  %v3608_v37 = vand.u32 4294901760, %v3607_v22 }
 0x238   : > { %5889 = vmatmul.mubr.f32.gmra.mrb[62].mxu1 %v8118_v38  ;;  %v8490_v38 = vsub.f32 %v8213_v58, %v9411_v12  ;;  %v3586_v58 = vsub.f32 %v8479_v11, %v9292_v32  ;;  %v3684_v5 = vsub.f32 %v8554_v19, %v9282_v7  ;;  %v8609_v62 = vsub.f32 %v8238_v55, %v9423_v44  ;;  %v8628_v55 = vld [vmem:[%s9187_s3] ss:$0 sm:$0xff] }
 0x239   : > { %v8639_v44 = vsub.f32 %v8267_v24, %v9425_v18 }
 0x23a   : > { %9412 = vst [vmem:[#allocation8_spill] sm:$0xff] %v8490_v38  ;;  %v9291_v56 = vand.u32 4294901760, %v8490_v38  ;;  %v3587_v8 = vand.u32 4294901760, %v3586_v58  ;;  %v3685_v12 = vand.u32 4294901760, %v3684_v5  ;;  %v8577_v58 = vpack.c.bf16 %v8490_v38, %v8479_v11 }
 0x23b   : > { %v9290_v5 = vand.u32 4294901760, %v8594_v60  ;;  %v9294_v28 = vand.u32 4294901760, %v8639_v44 }
 0x23c   : > { %v3593_v16 = vsub.f32 %v8490_v38, %v9291_v56  ;;  %v8573_v49 = vpack.c.bf16 %v3692_v45, %v3685_v12  ;;  %v9287_v12 = vand.u32 4294901760, %v8609_v62  ;;  %v8623_v45 = vsub.f32 %v8262_v47, %v9424_v48 }
 0x23d   : > { %v3600_v46 = vsub.f32 %v8594_v60, %v9290_v5  ;;  %v3614_v47 = vsub.f32 %v8604_v13, %v9288_v9 }
 0x23e   : > { %v3594_v1 = vand.u32 4294901760, %v3593_v16  ;;  %v8581_v16 = vpack.c.bf16 %v8531_v39, %v8529_v43  ;;  %v3621_v48 = vsub.f32 %v8609_v62, %v9287_v12  ;;  %v9293_v7 = vand.u32 4294901760, %v8623_v45 }
 0x240   : > { %v8514_v36 = vpack.c.bf16 %v3594_v1, %v3587_v8  ;;  %v8585_v8 = vpack.c.bf16 %v8547_v33, %v8542_v4  ;;  %v8589_v1 = vpack.c.bf16 %v8556_v35, %v8554_v19  ;;  %v3622_v12 = vand.u32 4294901760, %v3621_v48 }
 0x242   : > { %6516 = vmatprep.subr.bf16.mxu0 %v8514_v36 }
 0x257   : > { %v8456_v51 = vpop.f32.mrb[16].mxu0 }
 0x258   : > { %v8458_v20 = vpop.f32.mrb[17].mxu0  ;;  %vm3287_vm0 = vcmp.gt.f32.partialorder %v8456_v51, %v8618_v31  ;;  %v3601_v51 = vand.u32 4294901760, %v3600_v46  ;;  %v9426_v46 = vand.u32 4294901760, %v8287_v40 }
 0x259   : > { %vm3286_vm4 = vcmp.gt.f32.partialorder %v8458_v20, %v8618_v31  ;;  %v3628_v20 = vsub.f32 %v8623_v45, %v9293_v7 }
 0x25a   : > { %v8673_v22 = vsub.f32 %v8287_v40, %v9426_v46  ;;  %v8687_v56 = vpack.c.bf16 %v3608_v37, %v3601_v51  ;;  %v3635_v40 = vsub.f32 %v8639_v44, %v9294_v28 }
 0x25b   : > { %v8469_v25 = vpop.f32.mrb[18].mxu0 }
 0x25c   : > { %v8472_v26 = vpop.f32.mrb[19].mxu0  ;;  %vm3289_vm5 = vcmp.gt.f32.partialorder %v8469_v25, %v8618_v31  ;;  %v3636_v25 = vand.u32 4294901760, %v3635_v40 }
 0x25d   : > { %vm3288_vm6 = vcmp.gt.f32.partialorder %v8472_v26, %v8618_v31 }
 0x25f   : > { %v8493_v10 = vpop.f32.mrb[20].mxu0 }
 0x260   : > { %v8497_v6 = vpop.f32.mrb[21].mxu0  ;;  %vm3291_vm7 = vcmp.gt.f32.partialorder %v8493_v10, %v8618_v31  ;;  %v9428_v10 = vand.u32 4294901760, %v8673_v22 }
 0x261   : > { %vm3290_vm8 = vcmp.gt.f32.partialorder %v8497_v6, %v8618_v31 }
 0x263   : > { %v8509_v27 = vpop.f32.mrb[22].mxu0 }
 0x264   : > { %v8512_v17 = vpop.f32.mrb[23].mxu0  ;;  %vm3293_vm9 = vcmp.gt.f32.partialorder %v8509_v27, %v8618_v31 }
 0x265   : > { %vm3292_vm10 = vcmp.gt.f32.partialorder %v8512_v17, %v8618_v31 }
 0x267   : > { %v8516_v30 = vpop.f32.mrb[24].mxu0 }
 0x268   : > { %v8519_v57 = vpop.f32.mrb[25].mxu0  ;;  %vm3295_vm11 = vcmp.gt.f32.partialorder %v8516_v30, %v8618_v31 }
 0x269   : > { %vm3294_vm12 = vcmp.gt.f32.partialorder %v8519_v57, %v8618_v31 }
 0x26b   : > { %v8521_v23 = vpop.f32.mrb[26].mxu0 }
 0x26c   : > { %v8523_v14 = vpop.f32.mrb[27].mxu0  ;;  %vm3297_vm13 = vcmp.gt.f32.partialorder %v8521_v23, %v8618_v31 }
 0x26d   : > { %vm3296_vm14 = vcmp.gt.f32.partialorder %v8523_v14, %v8618_v31 }
 0x26f   : > { %v8525_v61 = vpop.f32.mrb[28].mxu0 }
 0x270   : > { %v8527_v3 = vpop.f32.mrb[29].mxu0  ;;  %vm3299_vm15 = vcmp.gt.f32.partialorder %v8525_v61, %v8618_v31 }
 0x271   : > { %vm3298_vm1 = vcmp.gt.f32.partialorder %v8527_v3, %v8618_v31 }
 0x273   : > { %v8533_v63 = vpop.f32.mrb[30].mxu0 }
 0x274   : > { %v8536_v29 = vpop.f32.mrb[31].mxu0  ;;  %vm3301_vm2 = vcmp.gt.f32.partialorder %v8533_v63, %v8618_v31 }
 0x275   : > { %vm3300_vm3 = vcmp.gt.f32.partialorder %v8536_v29, %v8618_v31 }
 0x2ef   : > { %v5869_v21 = vpop.f32.mrb[48].mxu1 }
 0x2f0   : > { %v6693_v24 = vadd.f32 %v5869_v21, %v8628_v55  ;;  %v3038_v18 = vpop.f32.mrb[49].mxu1  ;;  %v3615_v21 = vand.u32 4294901760, %v3614_v47 }
 0x2f1   : > { %v6694_v15 = vadd.f32 %v8628_v55, %v3038_v18 }
 0x2f2   : > { %v3303_v41 = vsel %vm3287_vm0, %v6693_v24, 0.0  ;;  %v8698_v32 = vpack.c.bf16 %v3622_v12, %v3615_v21 }
 0x2f3   : > { %v8663_v9 = vand.u32 4294901760, %v3303_v41  ;;  %v3302_v54 = vsel %vm3286_vm4, %v6694_v15, 0.0  ;;  %v5872_v5 = vpop.f32.mrb[50].mxu1 }
 0x2f4   : > { %v8675_v24 = vand.u32 4294901760, %v3302_v54  ;;  %v6695_v47 = vadd.f32 %v5872_v5, %v8628_v55  ;;  %v3050_v48 = vpop.f32.mrb[51].mxu1 }
 0x2f5   : > { %v8684_v15 = vsub.f32 %v3303_v41, %v8663_v9  ;;  %v6696_v18 = vadd.f32 %v8628_v55, %v3050_v48  ;;  %v9427_v41 = vand.u32 4294901760, %v8292_v50 }
 0x2f6   : > { %v8693_v5 = vsub.f32 %v3302_v54, %v8675_v24  ;;  %v3305_v46 = vsel %vm3289_vm5, %v6695_v47, 0.0 }
 0x2f7   : > { %v8703_v7 = vsub.f32 %v8292_v50, %v9427_v41  ;;  %v9297_v37 = vand.u32 4294901760, %v8684_v15  ;;  %v8706_v51 = vand.u32 4294901760, %v3305_v46  ;;  %v3304_v54 = vsel %vm3288_vm6, %v6696_v18, 0.0  ;;  %v5875_v48 = vpop.f32.mrb[52].mxu1 }
 0x2f8   : > { %v8714_v12 = vand.u32 4294901760, %v3304_v54  ;;  %v6697_v21 = vadd.f32 %v5875_v48, %v8628_v55  ;;  %v3062_v50 = vpop.f32.mrb[53].mxu1  ;;  %v9298_v47 = vand.u32 4294901760, %v8693_v5  ;;  %v3629_v41 = vand.u32 4294901760, %v3628_v20 }
 0x2f9   : > { %v3435_v26 = vsub.f32 %v8684_v15, %v9297_v37  ;;  %v8724_v18 = vsub.f32 %v3305_v46, %v8706_v51  ;;  %v6698_v28 = vadd.f32 %v8628_v55, %v3062_v50 }
 0x2fa   : > { %v8728_v35 = vsub.f32 %v3304_v54, %v8714_v12  ;;  %v3307_v48 = vsel %vm3291_vm7, %v6697_v21, 0.0  ;;  %v3425_v20 = vsub.f32 %v8693_v5, %v9298_v47  ;;  %v8748_v21 = vsub.f32 %v8673_v22, %v9428_v10 }
 0x2fb   : > { %v8737_v37 = vand.u32 4294901760, %v3307_v48  ;;  %v3306_v46 = vsel %vm3290_vm8, %v6698_v28, 0.0  ;;  %v5878_v40 = vpop.f32.mrb[54].mxu1  ;;  %v3436_v28 = vand.u32 4294901760, %v3435_v26  ;;  %v9429_v10 = vand.u32 4294901760, %v8724_v18 }
 0x2fc   : > { %v8750_v50 = vand.u32 4294901760, %v3306_v46  ;;  %v6699_v47 = vadd.f32 %v5878_v40, %v8628_v55  ;;  %v3074_v19 = vpop.f32.mrb[55].mxu1  ;;  %v3426_v33 = vand.u32 4294901760, %v3425_v20  ;;  %v9303_v6 = vand.u32 4294901760, %v8728_v35 }
 0x2fd   : > { %v8757_v4 = vsub.f32 %v3307_v48, %v8737_v37  ;;  %v6700_v54 = vadd.f32 %v8628_v55, %v3074_v19  ;;  %v3455_v39 = vsub.f32 %v8724_v18, %v9429_v10  ;;  %v8772_v48 = vpack.c.bf16 %v3636_v25, %v3629_v41 }
 0x2fe   : > { %v8764_v43 = vsub.f32 %v3306_v46, %v8750_v50  ;;  %v3309_v20 = vsel %vm3293_vm9, %v6699_v47, 0.0  ;;  %5951 = vmatprep.mubr.f32.mxu0 %v3426_v33  ;;  %v3445_v26 = vsub.f32 %v8728_v35, %v9303_v6  ;;  %v9430_v33 = vand.u32 4294901760, %v8703_v7 }
 0x2ff   : > { %v8774_v40 = vand.u32 4294901760, %v3309_v20  ;;  %v3308_v19 = vsel %vm3292_vm10, %v6700_v54, 0.0  ;;  %v5881_v10 = vpop.f32.mrb[56].mxu1  ;;  %5952 = vmatmul.mubr.f32.vlgmr.msra.gmra.mrb[32].mxu0 %v3436_v28  ;;  %v3456_v27 = vand.u32 4294901760, %v3455_v39 }
 0x300   : > { %v3649_v47 = vsub.f32 %v8703_v7, %v9430_v33  ;;  %v8785_v46 = vand.u32 4294901760, %v3308_v19  ;;  %v6701_v25 = vadd.f32 %v5881_v10, %v8628_v55  ;;  %6518 = vmatpush3.bf16.msra.mxu0 %v8514_v36  ;;  %v3086_v41 = vpop.f32.mrb[57].mxu1  ;;  %v3446_v17 = vand.u32 4294901760, %v3445_v26 }
 0x301   : > { %v9306_v54 = vand.u32 4294901760, %v8764_v43  ;;  %v8791_v28 = vsub.f32 %v3309_v20, %v8774_v40  ;;  %v6702_v6 = vadd.f32 %v8628_v55, %v3086_v41  ;;  %6520 = vmatprep.subr.bf16.mxu0 %v8687_v56  ;;  %v9431_v33 = vand.u32 4294901760, %v8757_v4 }
 0x302   : > { %v8799_v10 = vsub.f32 %v3308_v19, %v8785_v46  ;;  %v3311_v36 = vsel %vm3295_vm11, %v6701_v25, 0.0  ;;  %5954 = vmatprep.mubr.f32.mxu0 %v3446_v17  ;;  %v3643_v26 = vand.u32 4294901760, %v8748_v21  ;;  %v3650_v11 = vand.u32 4294901760, %v3649_v47 }
 0x303   : > { %v3475_v38 = vsub.f32 %v8757_v4, %v9431_v33  ;;  %v3465_v20 = vsub.f32 %v8764_v43, %v9306_v54  ;;  %v8808_v41 = vand.u32 4294901760, %v3311_v36  ;;  %v3310_v39 = vsel %vm3294_vm12, %v6702_v6, 0.0  ;;  %v5884_v33 = vpop.f32.mrb[58].mxu1  ;;  %5955 = vmatmul.mubr.f32.gmra.mrb[34].mxu0 %v3456_v27 }
 0x304   : > { %v9309_v19 = vand.u32 4294901760, %v8791_v28  ;;  %v8814_v30 = vand.u32 4294901760, %v3310_v39  ;;  %v6703_v25 = vadd.f32 %v5884_v33, %v8628_v55  ;;  %6522 = vmatpush3.bf16.msra.mxu0 %v8687_v56  ;;  %v3098_v17 = vpop.f32.mrb[59].mxu1  ;;  %v9310_v21 = vand.u32 4294901760, %v8799_v10 }
 0x305   : > { %v3466_v54 = vand.u32 4294901760, %v3465_v20  ;;  %v8820_v0 = vsub.f32 %v3311_v36, %v8808_v41  ;;  %v6704_v57 = vadd.f32 %v8628_v55, %v3098_v17  ;;  %6524 = vmatprep.subr.bf16.mxu0 %v8698_v32  ;;  %v3476_v6 = vand.u32 4294901760, %v3475_v38 }
 0x306   : > { %v3495_v27 = vsub.f32 %v8791_v28, %v9309_v19  ;;  %v8828_v47 = vsub.f32 %v3310_v39, %v8814_v30  ;;  %v3313_v56 = vsel %vm3297_vm13, %v6703_v25, 0.0  ;;  %v3485_v36 = vsub.f32 %v8799_v10, %v9310_v21 }
 0x307   : > { %5957 = vmatprep.mubr.f32.mxu0 %v3466_v54  ;;  %v8838_v38 = vand.u32 4294901760, %v3313_v56  ;;  %v3312_v20 = vsel %vm3296_vm14, %v6704_v57, 0.0  ;;  %v5887_v39 = vpop.f32.mrb[60].mxu1  ;;  %v6531_v33 = vpack.c.bf16 %v3650_v11, %v3643_v26  ;;  %v9313_v23 = vand.u32 4294901760, %v8820_v0 }
 0x308   : > { %5958 = vmatmul.mubr.f32.gmra.mrb[36].mxu0 %v3476_v6  ;;  %v8844_v25 = vand.u32 4294901760, %v3312_v20  ;;  %v6705_v54 = vadd.f32 %v5887_v39, %v8628_v55  ;;  %v3110_v17 = vpop.f32.mrb[61].mxu1  ;;  %v3486_v19 = vand.u32 4294901760, %v3485_v36  ;;  %v9314_v21 = vand.u32 4294901760, %v8828_v47 }
 0x309   : > { %6526 = vmatpush3.bf16.msra.mxu0 %v8698_v32  ;;  %v8850_v59 = vsub.f32 %v3313_v56, %v8838_v38  ;;  %v6706_v14 = vadd.f32 %v8628_v55, %v3110_v17  ;;  %v3496_v11 = vand.u32 4294901760, %v3495_v27  ;;  %v3515_v26 = vsub.f32 %v8820_v0, %v9313_v23 }
 0x30a   : > { %6528 = vmatprep.subr.bf16.mxu0 %v8772_v48  ;;  %v8858_v57 = vsub.f32 %v3312_v20, %v8844_v25  ;;  %v3315_v32 = vsel %vm3299_vm15, %v6705_v54, 0.0  ;;  %5960 = vmatprep.mubr.f32.mxu0 %v3486_v19  ;;  %v3505_v6 = vsub.f32 %v8828_v47, %v9314_v21 }
 0x30b   : > { %v8868_v27 = vand.u32 4294901760, %v3315_v32  ;;  %v3314_v56 = vsel %vm3298_vm1, %v6706_v14, 0.0  ;;  %v5890_v36 = vpop.f32.mrb[62].mxu1  ;;  %v3534_v61 = vand.u32 4294901760, %v8850_v59 }
 0x30c   : > { %5961 = vmatmul.mubr.f32.gmra.mrb[38].mxu0 %v3496_v11  ;;  %v8876_v19 = vand.u32 4294901760, %v3314_v56  ;;  %v6707_v20 = vadd.f32 %v5890_v36, %v8628_v55  ;;  %v3122_v39 = vpop.f32.mrb[63].mxu1  ;;  %v3506_v54 = vand.u32 4294901760, %v3505_v6  ;;  %v3524_v17 = vand.u32 4294901760, %v8858_v57 }
 0x30d   : > { %6530 = vmatpush3.bf16.msra.mxu0 %v8772_v48  ;;  %v8882_v3 = vsub.f32 %v3315_v32, %v8868_v27  ;;  %v6708_v14 = vadd.f32 %v8628_v55, %v3122_v39  ;;  %v3516_v11 = vand.u32 4294901760, %v3515_v26  ;;  %v3535_v23 = vsub.f32 %v8850_v59, %v3534_v61 }
 0x30e   : > { %6532 = vmatprep.subr.bf16.mxu0 %v6531_v33  ;;  %v8889_v21 = vsub.f32 %v3314_v56, %v8876_v19  ;;  %v3317_v48 = vsel %vm3301_vm2, %v6707_v20, 0.0  ;;  %5963 = vmatprep.mubr.f32.mxu0 %v3506_v54  ;;  %v3525_v32 = vsub.f32 %v8858_v57, %v3524_v17 }
 0x30f   : > { %v8897_v6 = vand.u32 4294901760, %v3317_v48  ;;  %v3316_v55 = vsel %vm3300_vm3, %v6708_v14, 0.0  ;;  %v3554_v26 = vand.u32 4294901760, %v8882_v3  ;;  %v3536_v39 = vand.u32 4294901760, %v3535_v23 }
 0x310   : > { %5964 = vmatmul.mubr.f32.gmra.mrb[40].mxu0 %v3516_v11  ;;  %v8903_v56 = vand.u32 4294901760, %v3316_v55  ;;  %v3526_v36 = vand.u32 4294901760, %v3525_v32  ;;  %v3544_v63 = vand.u32 4294901760, %v8889_v21 }
 0x311   : > { %6534 = vmatpush3.bf16.msra.mxu0 %v6531_v33  ;;  %v8907_v20 = vsub.f32 %v3317_v48, %v8897_v6  ;;  %v3555_v29 = vsub.f32 %v8882_v3, %v3554_v26 }
 0x312   : > { %6536 = vmatprep.subr.bf16.mxu0 %v8558_v2  ;;  %v8914_v31 = vsub.f32 %v3316_v55, %v8903_v56  ;;  %5966 = vmatprep.mubr.f32.mxu0 %v3526_v36  ;;  %v3545_v33 = vsub.f32 %v8889_v21, %v3544_v63  ;;  %v6551_v36 = vpack.c.bf16 %v8599_v53, %v8594_v60 }
 0x313   : > { %v3574_v54 = vand.u32 4294901760, %v8907_v20  ;;  %v3556_v11 = vand.u32 4294901760, %v3555_v29  ;;  %v9436_v29 = vld [vmem:[#allocation6_spill] sm:$0xff] }
 0x314   : > { %5967 = vmatmul.mubr.f32.gmra.mrb[42].mxu0 %v3536_v39  ;;  %v3546_v14 = vand.u32 4294901760, %v3545_v33  ;;  %v3564_v23 = vand.u32 4294901760, %v8914_v31  ;;  %v9435_v39 = vld [vmem:[#allocation5_spill] sm:$0xff]  ;;  %v9437_v33 = vld [vmem:[#allocation11_spill] sm:$0xff] }
 0x315   : > { %6538 = vmatpush3.bf16.msra.mxu0 %v8558_v2  ;;  %v3575_v48 = vsub.f32 %v8907_v20, %v3574_v54 }
 0x316   : > { %6540 = vmatprep.subr.bf16.mxu0 %v8571_v34  ;;  %5969 = vmatprep.mubr.f32.mxu0 %v3546_v14  ;;  %v3565_v32 = vsub.f32 %v8914_v31, %v3564_v23  ;;  %v9438_v14 = vld [vmem:[#allocation7_spill] sm:$0xff] }
 0x317   : > { %v3576_v2 = vand.u32 4294901760, %v3575_v48  ;;  %v9440_v48 = vld [vmem:[#allocation8_spill] sm:$0xff] }
 0x318   : > { %5970 = vmatmul.mubr.f32.gmra.mrb[44].mxu0 %v3556_v11  ;;  %v3566_v55 = vand.u32 4294901760, %v3565_v32  ;;  %v9439_v11 = vand.u32 4294901760, %v9438_v14  ;;  %v9441_v32 = vand.u32 4294901760, %v9440_v48  ;;  %v9446_v14 = vand.u32 4294901760, %v8728_v35 }
 0x319   : > { %6542 = vmatpush3.bf16.msra.mxu0 %v8571_v34  ;;  %v6555_v34 = vpack.c.bf16 %v8609_v62, %v8604_v13  ;;  %v9448_v48 = vand.u32 4294901760, %v8609_v62  ;;  %v9455_v62 = vand.u32 4294901760, %v8673_v22 }
 0x31a   : > { %6544 = vmatprep.subr.bf16.mxu0 %v8573_v49  ;;  %5972 = vmatprep.mubr.f32.mxu0 %v3566_v55  ;;  %v6611_v55 = vpack.c.bf16 %v9441_v32, %v9439_v11  ;;  %v9447_v11 = vand.u32 4294901760, %v8604_v13  ;;  %v9449_v32 = vand.u32 4294901760, %v8724_v18  ;;  %v9454_v13 = vand.u32 4294901760, %v8799_v10 }
 0x31c   : > { %5973 = vmatmul.mubr.f32.gmra.mrb[46].mxu0 %v3576_v2  ;;  %v9442_v2 = vand.u32 4294901760, %v8693_v5 }
 0x31d   : > { %6546 = vmatpush3.bf16.msra.mxu0 %v8573_v49  ;;  %6007 = vmatprep.mubr.f32.mxu0 %v8675_v24  ;;  %v6559_v49 = vpack.c.bf16 %v8639_v44, %v8623_v45 }
 0x31e   : > { %6548 = vmatprep.subr.bf16.mxu0 %v8577_v58 }
 0x320   : > { %6008 = vmatmul.mubr.f32.vlgmr.msra.gmra.mrb[32].mxu0 %v8663_v9 }
 0x321   : > { %6550 = vmatpush3.bf16.msra.mxu0 %v8577_v58  ;;  %6010 = vmatprep.mubr.f32.mxu0 %v8714_v12  ;;  %v6563_v58 = vpack.c.bf16 %v8703_v7, %v8673_v22 }
 0x322   : > { %6552 = vmatprep.subr.bf16.mxu0 %v6551_v36 }
 0x324   : > { %6011 = vmatmul.mubr.f32.gmra.mrb[34].mxu0 %v8706_v51 }
 0x325   : > { %6554 = vmatpush3.bf16.msra.mxu0 %v6551_v36  ;;  %6013 = vmatprep.mubr.f32.mxu0 %v8750_v50  ;;  %v9443_v36 = vand.u32 4294901760, %v8594_v60  ;;  %v9450_v60 = vand.u32 4294901760, %v8764_v43 }
 0x326   : > { %6556 = vmatprep.subr.bf16.mxu0 %v6555_v34 }
 0x328   : > { %6014 = vmatmul.mubr.f32.gmra.mrb[36].mxu0 %v8737_v37 }
 0x329   : > { %6558 = vmatpush3.bf16.msra.mxu0 %v6555_v34  ;;  %6016 = vmatprep.mubr.f32.mxu0 %v8785_v46  ;;  %v9444_v34 = vand.u32 4294901760, %v8599_v53  ;;  %v9451_v53 = vand.u32 4294901760, %v8623_v45  ;;  %v9458_v45 = vand.u32 4294901760, %v8828_v47 }
 0x32a   : > { %6560 = vmatprep.subr.bf16.mxu0 %v6559_v49 }
 0x32c   : > { %6017 = vmatmul.mubr.f32.gmra.mrb[38].mxu0 %v8774_v40 }
 0x32d   : > { %6562 = vmatpush3.bf16.msra.mxu0 %v6559_v49  ;;  %6019 = vmatprep.mubr.f32.mxu0 %v8814_v30  ;;  %v6615_v49 = vpack.c.bf16 %v9444_v34, %v9443_v36  ;;  %v9461_v36 = vld [vmem:[#allocation10_spill] sm:$0xff] }
 0x32e   : > { %6564 = vmatprep.subr.bf16.mxu0 %v6563_v58  ;;  %v9462_v34 = vand.u32 4294901760, %v9461_v36 }
 0x330   : > { %6020 = vmatmul.mubr.f32.gmra.mrb[40].mxu0 %v8808_v41 }
 0x331   : > { %6566 = vmatpush3.bf16.msra.mxu0 %v6563_v58  ;;  %6022 = vmatprep.mubr.f32.mxu0 %v8844_v25  ;;  %v9445_v58 = vand.u32 4294901760, %v8684_v15 }
 0x332   : > { %6568 = vmatprep.subr.bf16.mxu0 %v8581_v16 }
 0x334   : > { %6023 = vmatmul.mubr.f32.gmra.mrb[42].mxu0 %v8838_v38 }
 0x335   : > { %6570 = vmatpush3.bf16.msra.mxu0 %v8581_v16  ;;  %6025 = vmatprep.mubr.f32.mxu0 %v8876_v19  ;;  %v9432_v16 = vld [vmem:[#allocation26_spill] sm:$0xff] }
 0x336   : > { %6572 = vmatprep.subr.bf16.mxu0 %v8585_v8 }
 0x338   : > { %6026 = vmatmul.mubr.f32.gmra.mrb[44].mxu0 %v8868_v27 }
 0x339   : > { %6574 = vmatpush3.bf16.msra.mxu0 %v8585_v8  ;;  %6028 = vmatprep.mubr.f32.mxu0 %v8903_v56  ;;  %v9433_v8 = vld [vmem:[#allocation27_spill] sm:$0xff] }
 0x33a   : > { %6576 = vmatprep.subr.bf16.mxu0 %v8589_v1 }
 0x33c   : > { %6029 = vmatmul.mubr.f32.gmra.mrb[46].mxu0 %v8897_v6 }
 0x33d   : > { %6578 = vmatpush3.bf16.msra.mxu0 %v8589_v1  ;;  %6063 = vmatprep.mubr.f32.mxu0 %v8693_v5  ;;  %v9434_v1 = vld [vmem:[#allocation28_spill] sm:$0xff]  ;;  %v6619_v5 = vpack.c.bf16 %v9448_v48, %v9447_v11  ;;  %v9470_v11 = vld [vmem:[#allocation15_spill] sm:$0xff] }
 0x33e   : > { %6580 = vmatprep.subr.bf16.mxu0 %v8246_v42  ;;  %v9471_v48 = vand.u32 4294901760, %v9470_v11 }
 0x340   : > { %6064 = vmatmul.mubr.f32.vlgmr.msra.gmra.mrb[32].mxu0 %v8684_v15  ;;  %v9452_v15 = vand.u32 4294901760, %v8639_v44 }
 0x341   : > { %6582 = vmatpush3.bf16.msra.mxu0 %v8246_v42  ;;  %6066 = vmatprep.mubr.f32.mxu0 %v8728_v35 }
 0x342   : > { %6584 = vmatprep.subr.bf16.mxu0 %v9432_v16  ;;  %v6623_v35 = vpack.c.bf16 %v9452_v15, %v9451_v53 }
 0x344   : > { %6067 = vmatmul.mubr.f32.gmra.mrb[34].mxu0 %v8724_v18  ;;  %v9456_v18 = vand.u32 4294901760, %v8703_v7  ;;  %v9464_v7 = vld [vmem:[#allocation12_spill] sm:$0xff] }
 0x345   : > { %6586 = vmatpush3.bf16.msra.mxu0 %v9432_v16  ;;  %6069 = vmatprep.mubr.f32.mxu0 %v8764_v43  ;;  %v9465_v22 = vand.u32 4294901760, %v9464_v7 }
 0x346   : > { %6588 = vmatprep.subr.bf16.mxu0 %v9433_v8  ;;  %v6627_v43 = vpack.c.bf16 %v9456_v18, %v9455_v62 }
 0x348   : > { %6070 = vmatmul.mubr.f32.gmra.mrb[36].mxu0 %v8757_v4 }
 0x349   : > { %6590 = vmatpush3.bf16.msra.mxu0 %v9433_v8  ;;  %6072 = vmatprep.mubr.f32.mxu0 %v8799_v10 }
 0x34a   : > { %6592 = vmatprep.subr.bf16.mxu0 %v9434_v1 }
 0x34c   : > { %6073 = vmatmul.mubr.f32.gmra.mrb[38].mxu0 %v8791_v28 }
 0x34d   : > { %6594 = vmatpush3.bf16.msra.mxu0 %v9434_v1  ;;  %6075 = vmatprep.mubr.f32.mxu0 %v8828_v47 }
 0x34e   : > { %6596 = vmatprep.subr.bf16.mxu0 %v9435_v39 }
 0x350   : > { %6076 = vmatmul.mubr.f32.gmra.mrb[40].mxu0 %v8820_v0 }
 0x351   : > { %6598 = vmatpush3.bf16.msra.mxu0 %v9435_v39  ;;  %6078 = vmatprep.mubr.f32.mxu0 %v8858_v57 }
 0x352   : > { %6600 = vmatprep.subr.bf16.mxu0 %v8460_v52 }
 0x354   : > { %6079 = vmatmul.mubr.f32.gmra.mrb[42].mxu0 %v8850_v59 }
 0x355   : > { %6602 = vmatpush3.bf16.msra.mxu0 %v8460_v52  ;;  %6081 = vmatprep.mubr.f32.mxu0 %v8889_v21 }
 0x356   : > { %6604 = vmatprep.subr.bf16.mxu0 %v9436_v29 }
 0x358   : > { %6082 = vmatmul.mubr.f32.gmra.mrb[44].mxu0 %v8882_v3 }
 0x359   : > { %6606 = vmatpush3.bf16.msra.mxu0 %v9436_v29  ;;  %6084 = vmatprep.mubr.f32.mxu0 %v8914_v31 }
 0x35a   : > { %6608 = vmatprep.subr.bf16.mxu0 %v9437_v33 }
 0x35c   : > { %6085 = vmatmul.mubr.f32.gmra.mrb[46].mxu0 %v8907_v20 }
 0x35d   : > { %6610 = vmatpush3.bf16.msra.mxu0 %v9437_v33  ;;  %6119 = vmatprep.mubr.f32.mxu0 %v9442_v2  ;;  %v9457_v2 = vand.u32 4294901760, %v8791_v28  ;;  %v9466_v28 = vld [vmem:[#allocation13_spill] sm:$0xff] }
 0x35e   : > { %6612 = vmatprep.subr.bf16.mxu0 %v6611_v55 }
 0x360   : > { %6120 = vmatmul.mubr.f32.vlgmr.msra.gmra.mrb[32].mxu0 %v9445_v58  ;;  %v9467_v58 = vand.u32 4294901760, %v9466_v28 }
 0x361   : > { %6614 = vmatpush3.bf16.msra.mxu0 %v6611_v55  ;;  %6122 = vmatprep.mubr.f32.mxu0 %v9446_v14  ;;  %v9453_v55 = vand.u32 4294901760, %v8757_v4  ;;  %v9459_v4 = vld [vmem:[#allocation9_spill] sm:$0xff] }
 0x362   : > { %6616 = vmatprep.subr.bf16.mxu0 %v6615_v49  ;;  %v9460_v44 = vand.u32 4294901760, %v9459_v4  ;;  %v6635_v47 = vpack.c.bf16 %v9467_v58, %v9465_v22 }
 0x364   : > { %6123 = vmatmul.mubr.f32.gmra.mrb[34].mxu0 %v9449_v32  ;;  %v6631_v10 = vpack.c.bf16 %v9462_v34, %v9460_v44 }
 0x365   : > { %6618 = vmatpush3.bf16.msra.mxu0 %v6615_v49  ;;  %6125 = vmatprep.mubr.f32.mxu0 %v9450_v60  ;;  %v9463_v49 = vand.u32 4294901760, %v8820_v0  ;;  %v9468_v0 = vld [vmem:[#allocation14_spill] sm:$0xff] }
 0x366   : > { %6620 = vmatprep.subr.bf16.mxu0 %v6619_v5  ;;  %v9469_v14 = vand.u32 4294901760, %v9468_v0 }
 0x368   : > { %6126 = vmatmul.mubr.f32.gmra.mrb[36].mxu0 %v9453_v55  ;;  %v6639_v57 = vpack.c.bf16 %v9471_v48, %v9469_v14 }
 0x369   : > { %6622 = vmatpush3.bf16.msra.mxu0 %v6619_v5  ;;  %6128 = vmatprep.mubr.f32.mxu0 %v9454_v13 }
 0x36a   : > { %6624 = vmatprep.subr.bf16.mxu0 %v6623_v35 }
 0x36c   : > { %6129 = vmatmul.mubr.f32.gmra.mrb[38].mxu0 %v9457_v2 }
 0x36d   : > { %6626 = vmatpush3.bf16.msra.mxu0 %v6623_v35  ;;  %6131 = vmatprep.mubr.f32.mxu0 %v9458_v45 }
 0x36e   : > { %6628 = vmatprep.subr.bf16.mxu0 %v6627_v43 }
 0x370   : > { %6132 = vmatmul.mubr.f32.gmra.mrb[40].mxu0 %v9463_v49 }
 0x371   : > { %6630 = vmatpush3.bf16.msra.mxu0 %v6627_v43  ;;  %6134 = vmatprep.mubr.f32.mxu0 %v3524_v17 }
 0x372   : > { %6632 = vmatprep.subr.bf16.mxu0 %v6631_v10 }
 0x374   : > { %6135 = vmatmul.mubr.f32.gmra.mrb[42].mxu0 %v3534_v61 }
 0x375   : > { %6634 = vmatpush3.bf16.msra.mxu0 %v6631_v10  ;;  %6137 = vmatprep.mubr.f32.mxu0 %v3544_v63 }
 0x376   : > { %6636 = vmatprep.subr.bf16.mxu0 %v6635_v47 }
 0x378   : > { %6138 = vmatmul.mubr.f32.gmra.mrb[44].mxu0 %v3554_v26 }
 0x379   : > { %6638 = vmatpush3.bf16.msra.mxu0 %v6635_v47  ;;  %6140 = vmatprep.mubr.f32.mxu0 %v3564_v23 }
 0x37a   : > { %6640 = vmatprep.subr.bf16.mxu0 %v6639_v57 }
 0x37c   : > { %6141 = vmatmul.mubr.f32.gmra.mrb[46].mxu0 %v3574_v54 }
 0x37d   : > { %6642 = vmatpush3.bf16.msra.mxu0 %v6639_v57  ;;  %6175 = vmatprep.mubr.f32.mxu0 %v8675_v24 }
 0x37e   : > { %6644 = vmatprep.subr.bf16.mxu0 %v8246_v42 }
 0x380   : > { %6176 = vmatmul.mubr.f32.vlgmr.msra.gmra.mrb[32].mxu0 %v8663_v9 }
 0x381   : > { %6646 = vmatpush3.bf16.msra.mxu0 %v8246_v42  ;;  %6178 = vmatprep.mubr.f32.mxu0 %v8714_v12  ;;  %v4778_v42 = vld [vmem:[%s9187_s3 + $0x1] ss:$0 sm:$0xff] }
 0x382   : > { %6648 = vmatprep.subr.bf16.mxu0 %v9432_v16 }
 0x384   : > { %6179 = vmatmul.mubr.f32.gmra.mrb[34].mxu0 %v8706_v51 }
 0x385   : > { %6650 = vmatpush3.bf16.msra.mxu0 %v9432_v16  ;;  %6181 = vmatprep.mubr.f32.mxu0 %v8750_v50 }
 0x386   : > { %6652 = vmatprep.subr.bf16.mxu0 %v9433_v8 }
 0x388   : > { %6182 = vmatmul.mubr.f32.gmra.mrb[36].mxu0 %v8737_v37 }
 0x389   : > { %6654 = vmatpush3.bf16.msra.mxu0 %v9433_v8  ;;  %6184 = vmatprep.mubr.f32.mxu0 %v8785_v46 }
 0x38a   : > { %6656 = vmatprep.subr.bf16.mxu0 %v9434_v1 }
 0x38c   : > { %6185 = vmatmul.mubr.f32.gmra.mrb[38].mxu0 %v8774_v40 }
 0x38d   : > { %6658 = vmatpush3.bf16.msra.mxu0 %v9434_v1  ;;  %6187 = vmatprep.mubr.f32.mxu0 %v8814_v30 }
 0x38e   : > { %6660 = vmatprep.subr.bf16.mxu0 %v9435_v39 }
 0x390   : > { %6188 = vmatmul.mubr.f32.gmra.mrb[40].mxu0 %v8808_v41 }
 0x391   : > { %6662 = vmatpush3.bf16.msra.mxu0 %v9435_v39  ;;  %6190 = vmatprep.mubr.f32.mxu0 %v8844_v25 }
 0x392   : > { %6664 = vmatprep.subr.bf16.mxu0 %v8460_v52 }
 0x394   : > { %6191 = vmatmul.mubr.f32.gmra.mrb[42].mxu0 %v8838_v38 }
 0x395   : > { %6666 = vmatpush3.bf16.msra.mxu0 %v8460_v52  ;;  %6193 = vmatprep.mubr.f32.mxu0 %v8876_v19 }
 0x396   : > { %6668 = vmatprep.subr.bf16.mxu0 %v9436_v29 }
 0x398   : > { %6194 = vmatmul.mubr.f32.gmra.mrb[44].mxu0 %v8868_v27 }
 0x399   : > { %6670 = vmatpush3.bf16.msra.mxu0 %v9436_v29  ;;  %6196 = vmatprep.mubr.f32.mxu0 %v8903_v56 }
 0x39a   : > { %6672 = vmatprep.subr.bf16.mxu0 %v9437_v33 }
 0x39c   : > { %6197 = vmatmul.mubr.f32.gmra.mrb[46].mxu0 %v8897_v6 }
 0x39d   : > { %6674 = vmatpush3.bf16.msra.mxu0 %v9437_v33  ;;  %6231 = vmatprep.mubr.f32.mxu0 %v8675_v24 }
 0x3a0   : > { %6232 = vmatmul.mubr.f32.vlgmr.msra.gmra.mrb[32].mxu0 %v8663_v9 }
 0x3a1   : > { %6234 = vmatprep.mubr.f32.mxu0 %v8714_v12 }
 0x3a4   : > { %6235 = vmatmul.mubr.f32.gmra.mrb[34].mxu0 %v8706_v51 }
 0x3a5   : > { %6237 = vmatprep.mubr.f32.mxu0 %v8750_v50 }
 0x3a8   : > { %6238 = vmatmul.mubr.f32.gmra.mrb[36].mxu0 %v8737_v37 }
 0x3a9   : > { %6240 = vmatprep.mubr.f32.mxu0 %v8785_v46 }
 0x3ac   : > { %6241 = vmatmul.mubr.f32.gmra.mrb[38].mxu0 %v8774_v40 }
 0x3ad   : > { %6243 = vmatprep.mubr.f32.mxu0 %v8814_v30 }
 0x3b0   : > { %6244 = vmatmul.mubr.f32.gmra.mrb[40].mxu0 %v8808_v41 }
 0x3b1   : > { %6246 = vmatprep.mubr.f32.mxu0 %v8844_v25 }
 0x3b4   : > { %6247 = vmatmul.mubr.f32.gmra.mrb[42].mxu0 %v8838_v38 }
 0x3b5   : > { %6249 = vmatprep.mubr.f32.mxu0 %v8876_v19 }
 0x3b8   : > { %6250 = vmatmul.mubr.f32.gmra.mrb[44].mxu0 %v8868_v27 }
 0x3b9   : > { %6252 = vmatprep.mubr.f32.mxu0 %v8903_v56 }
 0x3bc   : > { %6253 = vmatmul.mubr.f32.gmra.mrb[46].mxu0 %v8897_v6 }
 0x473   : > { %v6233_v52 = vpop.f32.mrb[32].mxu0 }
 0x474   : > { %v6709_v59 = vadd.f32 %v6233_v52, %v4778_v42  ;;  %v4533_v9 = vpop.f32.mrb[33].mxu0 }
 0x475   : > { %v6710_v24 = vadd.f32 %v4778_v42, %v4533_v9 }
 0x476   : > { %4628 = vst [vmem:[%s9114_s15 + $0x8] sm:$0xff] %v6709_v59 }
 0x477   : > { %4627 = vst [vmem:[%s9114_s15] sm:$0xff] %v6710_v24  ;;  %v6236_v37 = vpop.f32.mrb[34].mxu0 }
 0x478   : > { %v6711_v51 = vadd.f32 %v6236_v37, %v4778_v42  ;;  %v4545_v12 = vpop.f32.mrb[35].mxu0 }
 0x479   : > { %v6712_v50 = vadd.f32 %v4778_v42, %v4545_v12 }
 0x47a   : > { %4630 = vst [vmem:[%s9114_s15 + $0x18] sm:$0xff] %v6711_v51 }
 0x47b   : > { %4629 = vst [vmem:[%s9114_s15 + $0x10] sm:$0xff] %v6712_v50  ;;  %v6239_v40 = vpop.f32.mrb[36].mxu0 }
 0x47c   : > { %v6713_v46 = vadd.f32 %v6239_v40, %v4778_v42  ;;  %v4557_v41 = vpop.f32.mrb[37].mxu0 }
 0x47d   : > { %v6714_v30 = vadd.f32 %v4778_v42, %v4557_v41 }
 0x47e   : > { %4632 = vst [vmem:[%s9114_s15 + $0x28] sm:$0xff] %v6713_v46 }
 0x47f   : > { %4631 = vst [vmem:[%s9114_s15 + $0x20] sm:$0xff] %v6714_v30  ;;  %v6242_v21 = vpop.f32.mrb[38].mxu0 }
 0x480   : > { %v6715_v38 = vadd.f32 %v6242_v21, %v4778_v42  ;;  %v4569_v25 = vpop.f32.mrb[39].mxu0 }
 0x481   : > { %v6716_v27 = vadd.f32 %v4778_v42, %v4569_v25 }
 0x482   : > { %4634 = vst [vmem:[%s9114_s15 + $0x38] sm:$0xff] %v6715_v38 }
 0x483   : > { %4633 = vst [vmem:[%s9114_s15 + $0x30] sm:$0xff] %v6716_v27  ;;  %v6245_v61 = vpop.f32.mrb[40].mxu0 }
 0x484   : > { %v6717_v19 = vadd.f32 %v6245_v61, %v4778_v42  ;;  %v4581_v17 = vpop.f32.mrb[41].mxu0 }
 0x485   : > { %v6718_v3 = vadd.f32 %v4778_v42, %v4581_v17 }
 0x486   : > { %4636 = vst [vmem:[%s9114_s15 + $0x48] sm:$0xff] %v6717_v19 }
 0x487   : > { %4635 = vst [vmem:[%s9114_s15 + $0x40] sm:$0xff] %v6718_v3  ;;  %v6248_v6 = vpop.f32.mrb[42].mxu0 }
 0x488   : > { %v6719_v26 = vadd.f32 %v6248_v6, %v4778_v42  ;;  %v4593_v56 = vpop.f32.mrb[43].mxu0 }
 0x489   : > { %v6720_v63 = vadd.f32 %v4778_v42, %v4593_v56 }
 0x48a   : > { %4638 = vst [vmem:[%s9114_s15 + $0x58] sm:$0xff] %v6719_v26 }
 0x48b   : > { %4637 = vst [vmem:[%s9114_s15 + $0x50] sm:$0xff] %v6720_v63  ;;  %v6251_v20 = vpop.f32.mrb[44].mxu0 }
 0x48c   : > { %v6721_v31 = vadd.f32 %v6251_v20, %v4778_v42  ;;  %v4605_v54 = vpop.f32.mrb[45].mxu0 }
 0x48d   : > { %v6722_v23 = vadd.f32 %v4778_v42, %v4605_v54 }
 0x48e   : > { %4640 = vst [vmem:[%s9114_s15 + $0x68] sm:$0xff] %v6721_v31 }
 0x48f   : > { %4639 = vst [vmem:[%s9114_s15 + $0x60] sm:$0xff] %v6722_v23  ;;  %v6254_v16 = vpop.f32.mrb[46].mxu0 }
 0x490   : > { %v6723_v8 = vadd.f32 %v6254_v16, %v4778_v42  ;;  %v4617_v1 = vpop.f32.mrb[47].mxu0 }
 0x491   : > { %v6724_v39 = vadd.f32 %v4778_v42, %v4617_v1 }
 0x492   : > { %4642 = vst [vmem:[%s9114_s15 + $0x78] sm:$0xff] %v6723_v8 }
 0x493   : > { %4641 = vst [vmem:[%s9114_s15 + $0x70] sm:$0xff] %v6724_v39 }
 0x494   : > { %7018 = shalt.err (!%p7015_p3)
}
 0x495   : > { %s7019_s8 = scalar_lea.hbm %s9135_s19, 2048  ;;  %s7023_s14 = scalar_lea.hbm %s9191_s7, 8192 }
 0x496   : > { %p7020_p4 = scmp.ne.s32.totalorder %s9135_s19, %s7019_s8  ;;  %p7024_p9 = scmp.lt.u32.totalorder %s9135_s19, %s9191_s7 }
 0x497   : > { %p7025_p10 = scmp.lt.u32.totalorder %s7023_s14, %s7019_s8  ;;  %p7027_p12 = scmp.lt.u32.totalorder %s7019_s8, %s9135_s19 }
 0x498   : > { %p7021_p7 = pnand %p7020_p4, %p7150_p5 }
 0x499   : > { %p7026_p11 = por %p7025_p10, %p7024_p9 }
 0x49a   : > { %p7022_p8 = pneg %p7021_p7 }
 0x49b   : > { %p7028_p13 = por %p7027_p12, %p7026_p11 }
 0x49d   : > { %p7029_p0 = pnand %p7028_p13, %p7022_p8 }
 0x49f   : > { %7032 = shalt.err (!%p7029_p0)
}
 0x4a0   : > { %s7070_s17 = smov 128   ;;  %s7071_s18 = smov 8  }
 0x4a1   : > { %6949 = dma.vmem_to_hbm [thread:$0]  (%p7150_p5), %s9137_s21, 2048, %s9135_s19, %s9143_s28, %s7070_s17, %s7070_s17, %s7071_s18  }
 0x4a2 PF: > { %p6955_p1 = scmp.ge.s32.totalorder %s7067_s27, 2  ;;  %s4672_s20 = sand.u32 1, %s7055_s24  }
 0x4a3   : > { %s4673_s22 = scalar_lea.sflag [#allocation3], %s4672_s20 }
 0x4a4   : > { %p6952_p2 = pnand %p6955_p1, %p7154_p6 }
 0x4a6   : > { %7050 = dma.done.wait (!%p6952_p2), %s4673_s22, 2048  }
 0x4a7   : > { %7052 = vsyncadd (!%p6952_p2), %s4673_s22, 4294965248  ;;  %p17_p3 = scmp.ge.s32.totalorder %s7137_s30, 6   ;;  %s9472_s24 = smov %s7059_s25 }
 0x4a8   : > { %s9473_s25 = smov %s7063_s26  ;;  %s9474_s26 = smov %s7148_s10 }
 0x4a9   : > { %s9475_s27 = smov %s7137_s30  ;;  %19 = sbr.rel (!%p17_p3) target bundleno = 3 (0x3), region = 83 }
 0x4b0   :  { %4678 = vsyncpa [#allocation3], 1 }
 0x4b1   :  { %4680 = vsyncpa [#allocation3 + $0x1], 1 }

</bundles_post_ra>
